<compile_context>
chip_gen: v6e
topology: v6e:2x2x1
jax: 0.10.0
libtpu: 0.0.40
codegen_flags: <defaults>
</compile_context>

<pallas_src>
import functools

import jax
import jax.numpy as jnp
from jax import lax
from jax.experimental import pallas as pl
from jax.experimental.pallas import tpu as pltpu


def _round_up(x, m):
    return ((x + m - 1) // m) * m


# ----------------------------------------------------------------------------
# Fused Pallas kernel: all TemporalBlocks + the output Linear in one invocation
# ----------------------------------------------------------------------------
def _tcn_fused_kernel(*refs, N, L, dilations, conv_cins, conv_packed, has_ds):
    """refs = [x2d, (w1,b1,w2,b2[,wd,bd]) per block, wlin, blin, out]."""
    nb = len(dilations)
    idx = 0
    x_ref = refs[idx]; idx += 1
    blocks = []
    for i in range(nb):
        w1, b1, w2, b2 = refs[idx:idx + 4]; idx += 4
        if has_ds[i]:
            wd, bd = refs[idx:idx + 2]; idx += 2
        else:
            wd, bd = None, None
        blocks.append((w1, b1, w2, b2, wd, bd))
    wlin_ref, blin_ref = refs[idx], refs[idx + 1]
    out_ref = refs[idx + 2]

    NL = N * L
    cpad = x_ref.shape[-1]

    # Row position of every row within its length-L sample (samples are contiguous
    # groups of L rows).  Reused for the conv edge masks and the fused Linear.
    row = lax.broadcasted_iota(jnp.int32, (NL, cpad), 0) % L

    def dilated_conv(h, d, cin, packed_taps, w_ref, b_ref):
        """'same' conv, kernel (1,3), stride 1, dilation d == ONE bf16 MXU matmul.

        The +/-d taps are built in-register with pltpu.roll on the sublane axis (XLU)
        plus a row mask that recreates the zero padding at sample edges, so there is
        no VMEM staging frame, no misaligned slice and no store->load chain. [R1, R2]
        """
        t_m = jnp.where(row >= d, pltpu.roll(h, d, axis=0), 0.0)           # x[l-d]
        t_p = jnp.where(row < L - d, pltpu.roll(h, NL - d, axis=0), 0.0)   # x[l+d]
        if packed_taps:
            # Tap j occupies lanes [j*cin, (j+1)*cin): K = Cpad instead of 3*Cpad. [R4]
            taps = (t_m + pltpu.roll(h, cin, axis=1)
                    + pltpu.roll(t_p, 2 * cin, axis=1))
        else:
            taps = jnp.concatenate([t_m, h, t_p], axis=-1)                 # K = 3*Cpad
        y = jnp.dot(taps.astype(jnp.bfloat16), w_ref[...],                 # bf16 MXU [R3]
                    preferred_element_type=jnp.float32)
        return y + b_ref[...]                                              # bias in f32

    h = x_ref[...]                                   # (N*L, Cpad) f32, lane-dense load
    for i, (w1, b1, w2, b2, wd, bd) in enumerate(blocks):
        d = dilations[i]
        cin, cout = conv_cins[i]
        pk1, pk2 = conv_packed[i]
        # conv1 -> ReLU -> (Dropout = identity in eval) -> conv2 -> ReLU
        a1 = jnp.maximum(dilated_conv(h, d, cin, pk1, w1, b1), 0.0)
        a2 = jnp.maximum(dilated_conv(a1, d, cout, pk2, w2, b2), 0.0)
        # Residual (1x1 downsample iff Cin != Cout); operand is register-resident. [R2]
        if wd is not None:
            res = jnp.dot(h.astype(jnp.bfloat16), wd[...],
                          preferred_element_type=jnp.float32) + bd[...]
        else:
            res = h
        h = jnp.maximum(a2 + res, 0.0)

    # Fused output Linear (Dropout = identity in eval):                            [R5]
    #   logits[n, :] = sum_l h[n*L + l, :] @ Wlin[l]  + b
    # as a sum over l of row-masked (N*L, Cpad) @ (Cpad, Opad) matmuls, followed by an
    # aligned per-sample reduction over each sample's L rows.
    p = None
    for l in range(L):
        h_l = jnp.where(row == l, h, 0.0).astype(jnp.bfloat16)
        t = jnp.dot(h_l, wlin_ref[l], preferred_element_type=jnp.float32)
        p = t if p is None else p + t
    parts = [jnp.sum(p[n * L:(n + 1) * L, :], axis=0, keepdims=True) for n in range(N)]
    logits = (parts[0] if N == 1 else jnp.concatenate(parts, axis=0)) + blin_ref[...]
    out_ref[...] = logits.astype(out_ref.dtype)


# ----------------------------------------------------------------------------
# One-time parameter packing (outside the hot path)
# ----------------------------------------------------------------------------
def pack_tcn_params(block_params, lin_w, lin_b, *, L):
    """Pack module parameters once:
      * channel axes zero-padded to Cpad lanes (multiple of 128),
      * the 3 conv taps folded into one MXU weight: (Cpad, Cpad) when 3*Cin <= Cpad
        (tap j at rows [j*Cin,(j+1)*Cin)) else (3*Cpad, Cpad),
      * the Linear weight permuted from PyTorch's NCW flatten (index c*L + l) into
        per-time-step (L, Cpad, Opad) slabs so the kernel needs no transpose,
      * all matmul weights cast to bf16 (f32 accumulate in-kernel); biases stay f32.
    """
    chans = [block_params[0]["w1"].shape[1]] + [p["w1"].shape[2] for p in block_params]
    cpad = _round_up(max(chans), 128)
    out_size = lin_w.shape[-1]
    opad = _round_up(out_size, 128)

    def pack_conv(w_kio):
        k, ci, co = w_kio.shape
        packed_taps = 3 * ci <= cpad
        kdim, stride = (cpad, ci) if packed_taps else (3 * cpad, cpad)
        w = jnp.zeros((kdim, cpad), jnp.float32)
        for j in range(k):
            w = w.at[j * stride:j * stride + ci, :co].set(w_kio[j])
        return w.astype(jnp.bfloat16), packed_taps

    def pad_bias(b, co):
        return jnp.zeros((1, cpad), jnp.float32).at[:, :co].set(b)

    packed, conv_packed = [], []
    for p in block_params:
        ci, co = p["w1"].shape[1], p["w1"].shape[2]
        w1, pk1 = pack_conv(p["w1"])
        w2, pk2 = pack_conv(p["w2"])
        q = {"w1": w1, "b1": pad_bias(p["b1"], co),
             "w2": w2, "b2": pad_bias(p["b2"], co)}
        if "wd" in p:
            q["wd"] = (jnp.zeros((cpad, cpad), jnp.float32)
                       .at[:ci, :co].set(p["wd"]).astype(jnp.bfloat16))
            q["bd"] = pad_bias(p["bd"], co)
        packed.append(q)
        conv_packed.append((pk1, pk2))

    c_last = block_params[-1]["w1"].shape[2]
    # PyTorch flattens (N, C, L) as index c*L + l; regroup into per-l (Cpad, Opad) slabs.
    w3 = jnp.transpose(lin_w.reshape(c_last, L, out_size), (1, 0, 2))       # (L, C, O)
    wlin = (jnp.zeros((L, cpad, opad), jnp.float32)
            .at[:, :c_last, :out_size].set(w3).astype(jnp.bfloat16))
    blin = jnp.zeros((1, opad), jnp.float32).at[:, :out_size].set(lin_b)

    meta = dict(cpad=cpad, opad=opad, out_size=out_size, L=L,
                chans=tuple(chans), conv_packed=tuple(conv_packed))
    return packed, wlin, blin, meta


# ----------------------------------------------------------------------------
# Forward wrapper
# ----------------------------------------------------------------------------
def temporal_conv_net(x_ncl, packed_blocks, wlin, blin, *, meta):
    """Full TemporalConvNet forward.  x_ncl: (N, num_inputs, L) -> (N, out_size)."""
    cpad, opad = meta["cpad"], meta["opad"]
    chans, conv_packed = meta["chans"], meta["conv_packed"]
    out_size, L = meta["out_size"], meta["L"]
    N, cin, L_in = x_ncl.shape
    assert L_in == L and cin == chans[0]
    nb = len(packed_blocks)
    dils = tuple(2 ** i for i in range(nb))
    NL = N * L

    # NCW -> channel-last, lane-padded to Cpad; no padded frame is materialized.   [R6]
    x_nlc = jnp.transpose(x_ncl, (0, 2, 1)).astype(jnp.float32)
    x2d = (jnp.zeros((NL, cpad), jnp.float32)
           .at[:, :cin].set(x_nlc.reshape(NL, cin)))

    flat_params, has_ds = [], []
    for q in packed_blocks:
        has_ds.append("wd" in q)
        flat_params += [q["w1"], q["b1"], q["w2"], q["b2"]]
        if "wd" in q:
            flat_params += [q["wd"], q["bd"]]

    # Advisory cost estimate for the XLA scheduler.
    flops = 0
    for i in range(nb):
        k1 = cpad if conv_packed[i][0] else 3 * cpad
        k2 = cpad if conv_packed[i][1] else 3 * cpad
        flops += 2 * NL * (k1 + k2) * cpad
        if has_ds[i]:
            flops += 2 * NL * cpad * cpad
    flops += 2 * NL * cpad * opad * L                   # fused Linear (as implemented)
    bytes_acc = (x2d.size * 4 + N * opad * 4
                 + sum(int(a.size) * a.dtype.itemsize for a in flat_params)
                 + int(wlin.size) * wlin.dtype.itemsize + int(blin.size) * 4)

    kernel = functools.partial(
        _tcn_fused_kernel, N=N, L=L, dilations=dils,
        conv_cins=tuple((chans[i], chans[i + 1]) for i in range(nb)),
        conv_packed=conv_packed, has_ds=tuple(has_ds))

    # One grid-less pallas_call for the whole network: single launch, activations stay
    # in registers/VMEM end to end (total parameter+activation footprint << 1 MiB).
    # NOTE: at production sizes add a row-tile grid with dimension_semantics
    # ("parallel",) for v7x's 2 TensorCores and size VMEM against 64 MiB.       [R7/R9]
    logits_pad = pl.pallas_call(
        kernel,
        out_shape=jax.ShapeDtypeStruct((N, opad), jnp.float32),
        cost_estimate=pl.CostEstimate(flops=int(flops), transcendentals=0,
                                      bytes_accessed=int(bytes_acc)),
    )(x2d, *flat_params, wlin, blin)

    # Lane padding of the logits is exactly zero; strip it.
    return logits_pad[:, :out_size]


# ----------------------------------------------------------------------------
# Pure-JAX reference (f32 math, same weights) for sanity checking the kernel
# ----------------------------------------------------------------------------
def _ref_conv1d(x_ncl, w_kio, b, dilation):
    w_oik = jnp.transpose(w_kio, (2, 1, 0))            # (O, I, K)
    y = lax.conv_general_dilated(
        x_ncl, w_oik, window_strides=(1,), padding=[(dilation, dilation)],
        rhs_dilation=(dilation,), dimension_numbers=("NCH", "OIH", "NCH"))
    return y + b.reshape(1, -1, 1)


def _ref_forward(x_ncl, block_params, lin_w, lin_b):
    h = x_ncl
    for i, p in enumerate(block_params):
        d = 2 ** i
        a = jax.nn.relu(_ref_conv1d(h, p["w1"], p["b1"][0], d))
        a = jax.nn.relu(_ref_conv1d(a, p["w2"], p["b2"][0], d))
        if "wd" in p:
            res = jnp.einsum("ncl,co->nol", h, p["wd"]) + p["bd"][0].reshape(1, -1, 1)
        else:
            res = h
        h = jax.nn.relu(a + res)
    flat = h.reshape(h.shape[0], -1)                    # PyTorch NCW flatten: c*L + l
    return flat @ lin_w + lin_b[0]


# ----------------------------------------------------------------------------
# Main
# ----------------------------------------------------------------------------
if __name__ == "__main__":
    # Small demo shapes.
    N, num_inputs, L = 2, 4, 16
    num_channels = (8, 8)
    out_size = 10

    key = jax.random.PRNGKey(0)

    def bf16_round(w):
        # The kernel stores matmul weights in bf16; give the f32 reference the exact
        # same (bf16-rounded) values so the comparison isolates kernel structure, and
        # the only remaining difference is the bf16 cast of activations at each dot.
        return w.astype(jnp.bfloat16).astype(jnp.float32)

    block_params = []
    cin = num_inputs
    for cout in num_channels:
        key, k1, k2, k3, k4, k5, k6 = jax.random.split(key, 7)
        p = {
            "w1": bf16_round(0.15 * jax.random.normal(k1, (3, cin, cout), jnp.float32)),
            "b1": 0.1 * jax.random.normal(k2, (1, cout), jnp.float32),
            "w2": bf16_round(0.15 * jax.random.normal(k3, (3, cout, cout), jnp.float32)),
            "b2": 0.1 * jax.random.normal(k4, (1, cout), jnp.float32),
        }
        if cin != cout:
            p["wd"] = bf16_round(0.15 * jax.random.normal(k5, (cin, cout), jnp.float32))
            p["bd"] = 0.1 * jax.random.normal(k6, (1, cout), jnp.float32)
        block_params.append(p)
        cin = cout

    # Output linear layer.  The original module hard-codes 300 time steps; the demo
    # uses in_features = L * num_channels[-1] with the small demo length L.
    F = L * num_channels[-1]
    key, kw, kb, kx = jax.random.split(key, 4)
    lin_w = bf16_round(0.1 * jax.random.normal(kw, (F, out_size), jnp.float32))
    lin_b = 0.1 * jax.random.normal(kb, (1, out_size), jnp.float32)

    x = jax.random.normal(kx, (N, num_inputs, L), jnp.float32)

    packed_blocks, wlin, blin, meta = pack_tcn_params(block_params, lin_w, lin_b, L=L)

    fwd = jax.jit(functools.partial(temporal_conv_net, meta=meta))
    out = jax.block_until_ready(fwd(x, packed_blocks, wlin, blin))

    ref = jax.block_until_ready(_ref_forward(x, block_params, lin_w, lin_b))
    assert out.shape == (N, out_size)
    # Tolerance covers the bf16 activation casts at the MXU (f32 accumulate, f32
    # elementwise math); structural errors would be orders of magnitude larger.
    assert jnp.allclose(out, ref, rtol=3e-2, atol=3e-2), "mismatch vs reference"

    print("KERNEL_OK")
</pallas_src>

<mosaic_0001>
module attributes {stable_mosaic.version = 11 : i64} {
  func.func @_tcn_fused_kernel(%arg0: memref<32x128xf32, #tpu.memory_space<vmem>>, %arg1: memref<128x128xbf16, #tpu.memory_space<vmem>>, %arg2: memref<1x128xf32, #tpu.memory_space<vmem>>, %arg3: memref<128x128xbf16, #tpu.memory_space<vmem>>, %arg4: memref<1x128xf32, #tpu.memory_space<vmem>>, %arg5: memref<128x128xbf16, #tpu.memory_space<vmem>>, %arg6: memref<1x128xf32, #tpu.memory_space<vmem>>, %arg7: memref<128x128xbf16, #tpu.memory_space<vmem>>, %arg8: memref<1x128xf32, #tpu.memory_space<vmem>>, %arg9: memref<128x128xbf16, #tpu.memory_space<vmem>>, %arg10: memref<1x128xf32, #tpu.memory_space<vmem>>, %arg11: memref<16x128x128xbf16, #tpu.memory_space<vmem>>, %arg12: memref<1x128xf32, #tpu.memory_space<vmem>>, %arg13: memref<2x128xf32, #tpu.memory_space<vmem>>) attributes {dimension_semantics = [], scalar_prefetch = 0 : i64, scratch_operands = 0 : i64, tpu.core_type = #tpu.core_type<tc>} {
    %0 = tpu.iota {dimensions = array<i32: 0>} : vector<32x128xi32>
    %c16_i32 = arith.constant 16 : i32
    %c0_i32 = arith.constant 0 : i32
    %1 = arith.cmpi eq, %c16_i32, %c0_i32 : i32
    %c1_i32 = arith.constant 1 : i32
    %2 = arith.select %1, %c1_i32, %c16_i32 : i32
    %3 = vector.broadcast %2 : i32 to vector<32x128xi32>
    %4 = arith.remsi %0, %3 : vector<32x128xi32>
    %c0_i32_0 = arith.constant 0 : i32
    %5 = vector.broadcast %c0_i32_0 : i32 to vector<32x128xi32>
    %6 = arith.cmpi ne, %4, %5 : vector<32x128xi32>
    %c0_i32_1 = arith.constant 0 : i32
    %7 = vector.broadcast %c0_i32_1 : i32 to vector<32x128xi32>
    %8 = arith.cmpi slt, %4, %7 : vector<32x128xi32>
    %c0_i32_2 = arith.constant 0 : i32
    %9 = arith.cmpi slt, %2, %c0_i32_2 : i32
    %10 = vector.broadcast %9 : i1 to vector<32x128xi1>
    %11 = vector.broadcast %10 : vector<32x128xi1> to vector<32x128xi1>
    %12 = arith.xori %8, %11 : vector<32x128xi1>
    %13 = arith.andi %12, %6 : vector<32x128xi1>
    %14 = vector.broadcast %2 : i32 to vector<32x128xi32>
    %15 = arith.addi %4, %14 : vector<32x128xi32>
    %16 = arith.select %13, %15, %4 : vector<32x128xi1>, vector<32x128xi32>
    %c0 = arith.constant 0 : index
    %c0_3 = arith.constant 0 : index
    %17 = vector.load %arg0[%c0, %c0_3] : memref<32x128xf32, #tpu.memory_space<vmem>>, vector<32x128xf32>
    %c1_i32_4 = arith.constant 1 : i32
    %18 = vector.broadcast %c1_i32_4 : i32 to vector<32x128xi32>
    %19 = arith.cmpi sge, %16, %18 : vector<32x128xi32>
    %c1_i32_5 = arith.constant 1 : i32
    %20 = tpu.dynamic_rotate %17 by %c1_i32_5 dim 0 : vector<32x128xf32>, i32 -> vector<32x128xf32>
    %cst = arith.constant 0.000000e+00 : f32
    %21 = vector.broadcast %cst : f32 to vector<32x128xf32>
    %22 = arith.select %19, %20, %21 : vector<32x128xi1>, vector<32x128xf32>
    %c15_i32 = arith.constant 15 : i32
    %23 = vector.broadcast %c15_i32 : i32 to vector<32x128xi32>
    %24 = arith.cmpi slt, %16, %23 : vector<32x128xi32>
    %c31_i32 = arith.constant 31 : i32
    %25 = tpu.dynamic_rotate %17 by %c31_i32 dim 0 : vector<32x128xf32>, i32 -> vector<32x128xf32>
    %cst_6 = arith.constant 0.000000e+00 : f32
    %26 = vector.broadcast %cst_6 : f32 to vector<32x128xf32>
    %27 = arith.select %24, %25, %26 : vector<32x128xi1>, vector<32x128xf32>
    %c4_i32 = arith.constant 4 : i32
    %28 = tpu.dynamic_rotate %17 by %c4_i32 dim 1 : vector<32x128xf32>, i32 -> vector<32x128xf32>
    %29 = arith.addf %22, %28 : vector<32x128xf32>
    %c8_i32 = arith.constant 8 : i32
    %30 = tpu.dynamic_rotate %27 by %c8_i32 dim 1 : vector<32x128xf32>, i32 -> vector<32x128xf32>
    %31 = arith.addf %29, %30 : vector<32x128xf32>
    %32 = arith.truncf %31 : vector<32x128xf32> to vector<32x128xbf16>
    %c0_7 = arith.constant 0 : index
    %c0_8 = arith.constant 0 : index
    %33 = vector.load %arg1[%c0_7, %c0_8] : memref<128x128xbf16, #tpu.memory_space<vmem>>, vector<128x128xbf16>
    %cst_9 = arith.constant dense<0.000000e+00> : vector<32x128xf32>
    %34 = tpu.matmul %32, %33, %cst_9 {dimension_numbers = #tpu.dot_dimension_numbers<[1], [0], [0], [1], [0, 0, 1, 1], [], []>} : vector<32x128xbf16>, vector<128x128xbf16>, vector<32x128xf32> -> vector<32x128xf32>
    %c0_10 = arith.constant 0 : index
    %c0_11 = arith.constant 0 : index
    %35 = vector.load %arg2[%c0_10, %c0_11] : memref<1x128xf32, #tpu.memory_space<vmem>>, vector<1x128xf32>
    %36 = vector.broadcast %35 : vector<1x128xf32> to vector<32x128xf32>
    %37 = arith.addf %34, %36 : vector<32x128xf32>
    %cst_12 = arith.constant 0.000000e+00 : f32
    %38 = vector.broadcast %cst_12 : f32 to vector<32x128xf32>
    %39 = arith.maximumf %37, %38 : vector<32x128xf32>
    %c1_i32_13 = arith.constant 1 : i32
    %40 = vector.broadcast %c1_i32_13 : i32 to vector<32x128xi32>
    %41 = arith.cmpi sge, %16, %40 : vector<32x128xi32>
    %c1_i32_14 = arith.constant 1 : i32
    %42 = tpu.dynamic_rotate %39 by %c1_i32_14 dim 0 : vector<32x128xf32>, i32 -> vector<32x128xf32>
    %cst_15 = arith.constant 0.000000e+00 : f32
    %43 = vector.broadcast %cst_15 : f32 to vector<32x128xf32>
    %44 = arith.select %41, %42, %43 : vector<32x128xi1>, vector<32x128xf32>
    %c15_i32_16 = arith.constant 15 : i32
    %45 = vector.broadcast %c15_i32_16 : i32 to vector<32x128xi32>
    %46 = arith.cmpi slt, %16, %45 : vector<32x128xi32>
    %c31_i32_17 = arith.constant 31 : i32
    %47 = tpu.dynamic_rotate %39 by %c31_i32_17 dim 0 : vector<32x128xf32>, i32 -> vector<32x128xf32>
    %cst_18 = arith.constant 0.000000e+00 : f32
    %48 = vector.broadcast %cst_18 : f32 to vector<32x128xf32>
    %49 = arith.select %46, %47, %48 : vector<32x128xi1>, vector<32x128xf32>
    %c8_i32_19 = arith.constant 8 : i32
    %50 = tpu.dynamic_rotate %39 by %c8_i32_19 dim 1 : vector<32x128xf32>, i32 -> vector<32x128xf32>
    %51 = arith.addf %44, %50 : vector<32x128xf32>
    %c16_i32_20 = arith.constant 16 : i32
    %52 = tpu.dynamic_rotate %49 by %c16_i32_20 dim 1 : vector<32x128xf32>, i32 -> vector<32x128xf32>
    %53 = arith.addf %51, %52 : vector<32x128xf32>
    %54 = arith.truncf %53 : vector<32x128xf32> to vector<32x128xbf16>
    %c0_21 = arith.constant 0 : index
    %c0_22 = arith.constant 0 : index
    %55 = vector.load %arg3[%c0_21, %c0_22] : memref<128x128xbf16, #tpu.memory_space<vmem>>, vector<128x128xbf16>
    %cst_23 = arith.constant dense<0.000000e+00> : vector<32x128xf32>
    %56 = tpu.matmul %54, %55, %cst_23 {dimension_numbers = #tpu.dot_dimension_numbers<[1], [0], [0], [1], [0, 0, 1, 1], [], []>} : vector<32x128xbf16>, vector<128x128xbf16>, vector<32x128xf32> -> vector<32x128xf32>
    %c0_24 = arith.constant 0 : index
    %c0_25 = arith.constant 0 : index
    %57 = vector.load %arg4[%c0_24, %c0_25] : memref<1x128xf32, #tpu.memory_space<vmem>>, vector<1x128xf32>
    %58 = vector.broadcast %57 : vector<1x128xf32> to vector<32x128xf32>
    %59 = arith.addf %56, %58 : vector<32x128xf32>
    %cst_26 = arith.constant 0.000000e+00 : f32
    %60 = vector.broadcast %cst_26 : f32 to vector<32x128xf32>
    %61 = arith.maximumf %59, %60 : vector<32x128xf32>
    %62 = arith.truncf %17 : vector<32x128xf32> to vector<32x128xbf16>
    %c0_27 = arith.constant 0 : index
    %c0_28 = arith.constant 0 : index
    %63 = vector.load %arg5[%c0_27, %c0_28] : memref<128x128xbf16, #tpu.memory_space<vmem>>, vector<128x128xbf16>
    %cst_29 = arith.constant dense<0.000000e+00> : vector<32x128xf32>
    %64 = tpu.matmul %62, %63, %cst_29 {dimension_numbers = #tpu.dot_dimension_numbers<[1], [0], [0], [1], [0, 0, 1, 1], [], []>} : vector<32x128xbf16>, vector<128x128xbf16>, vector<32x128xf32> -> vector<32x128xf32>
    %c0_30 = arith.constant 0 : index
    %c0_31 = arith.constant 0 : index
    %65 = vector.load %arg6[%c0_30, %c0_31] : memref<1x128xf32, #tpu.memory_space<vmem>>, vector<1x128xf32>
    %66 = vector.broadcast %65 : vector<1x128xf32> to vector<32x128xf32>
    %67 = arith.addf %64, %66 : vector<32x128xf32>
    %68 = arith.addf %61, %67 : vector<32x128xf32>
    %cst_32 = arith.constant 0.000000e+00 : f32
    %69 = vector.broadcast %cst_32 : f32 to vector<32x128xf32>
    %70 = arith.maximumf %68, %69 : vector<32x128xf32>
    %c2_i32 = arith.constant 2 : i32
    %71 = vector.broadcast %c2_i32 : i32 to vector<32x128xi32>
    %72 = arith.cmpi sge, %16, %71 : vector<32x128xi32>
    %c2_i32_33 = arith.constant 2 : i32
    %73 = tpu.dynamic_rotate %70 by %c2_i32_33 dim 0 : vector<32x128xf32>, i32 -> vector<32x128xf32>
    %cst_34 = arith.constant 0.000000e+00 : f32
    %74 = vector.broadcast %cst_34 : f32 to vector<32x128xf32>
    %75 = arith.select %72, %73, %74 : vector<32x128xi1>, vector<32x128xf32>
    %c14_i32 = arith.constant 14 : i32
    %76 = vector.broadcast %c14_i32 : i32 to vector<32x128xi32>
    %77 = arith.cmpi slt, %16, %76 : vector<32x128xi32>
    %c30_i32 = arith.constant 30 : i32
    %78 = tpu.dynamic_rotate %70 by %c30_i32 dim 0 : vector<32x128xf32>, i32 -> vector<32x128xf32>
    %cst_35 = arith.constant 0.000000e+00 : f32
    %79 = vector.broadcast %cst_35 : f32 to vector<32x128xf32>
    %80 = arith.select %77, %78, %79 : vector<32x128xi1>, vector<32x128xf32>
    %c8_i32_36 = arith.constant 8 : i32
    %81 = tpu.dynamic_rotate %70 by %c8_i32_36 dim 1 : vector<32x128xf32>, i32 -> vector<32x128xf32>
    %82 = arith.addf %75, %81 : vector<32x128xf32>
    %c16_i32_37 = arith.constant 16 : i32
    %83 = tpu.dynamic_rotate %80 by %c16_i32_37 dim 1 : vector<32x128xf32>, i32 -> vector<32x128xf32>
    %84 = arith.addf %82, %83 : vector<32x128xf32>
    %85 = arith.truncf %84 : vector<32x128xf32> to vector<32x128xbf16>
    %c0_38 = arith.constant 0 : index
    %c0_39 = arith.constant 0 : index
    %86 = vector.load %arg7[%c0_38, %c0_39] : memref<128x128xbf16, #tpu.memory_space<vmem>>, vector<128x128xbf16>
    %cst_40 = arith.constant dense<0.000000e+00> : vector<32x128xf32>
    %87 = tpu.matmul %85, %86, %cst_40 {dimension_numbers = #tpu.dot_dimension_numbers<[1], [0], [0], [1], [0, 0, 1, 1], [], []>} : vector<32x128xbf16>, vector<128x128xbf16>, vector<32x128xf32> -> vector<32x128xf32>
    %c0_41 = arith.constant 0 : index
    %c0_42 = arith.constant 0 : index
    %88 = vector.load %arg8[%c0_41, %c0_42] : memref<1x128xf32, #tpu.memory_space<vmem>>, vector<1x128xf32>
    %89 = vector.broadcast %88 : vector<1x128xf32> to vector<32x128xf32>
    %90 = arith.addf %87, %89 : vector<32x128xf32>
    %cst_43 = arith.constant 0.000000e+00 : f32
    %91 = vector.broadcast %cst_43 : f32 to vector<32x128xf32>
    %92 = arith.maximumf %90, %91 : vector<32x128xf32>
    %c2_i32_44 = arith.constant 2 : i32
    %93 = vector.broadcast %c2_i32_44 : i32 to vector<32x128xi32>
    %94 = arith.cmpi sge, %16, %93 : vector<32x128xi32>
    %c2_i32_45 = arith.constant 2 : i32
    %95 = tpu.dynamic_rotate %92 by %c2_i32_45 dim 0 : vector<32x128xf32>, i32 -> vector<32x128xf32>
    %cst_46 = arith.constant 0.000000e+00 : f32
    %96 = vector.broadcast %cst_46 : f32 to vector<32x128xf32>
    %97 = arith.select %94, %95, %96 : vector<32x128xi1>, vector<32x128xf32>
    %c14_i32_47 = arith.constant 14 : i32
    %98 = vector.broadcast %c14_i32_47 : i32 to vector<32x128xi32>
    %99 = arith.cmpi slt, %16, %98 : vector<32x128xi32>
    %c30_i32_48 = arith.constant 30 : i32
    %100 = tpu.dynamic_rotate %92 by %c30_i32_48 dim 0 : vector<32x128xf32>, i32 -> vector<32x128xf32>
    %cst_49 = arith.constant 0.000000e+00 : f32
    %101 = vector.broadcast %cst_49 : f32 to vector<32x128xf32>
    %102 = arith.select %99, %100, %101 : vector<32x128xi1>, vector<32x128xf32>
    %c8_i32_50 = arith.constant 8 : i32
    %103 = tpu.dynamic_rotate %92 by %c8_i32_50 dim 1 : vector<32x128xf32>, i32 -> vector<32x128xf32>
    %104 = arith.addf %97, %103 : vector<32x128xf32>
    %c16_i32_51 = arith.constant 16 : i32
    %105 = tpu.dynamic_rotate %102 by %c16_i32_51 dim 1 : vector<32x128xf32>, i32 -> vector<32x128xf32>
    %106 = arith.addf %104, %105 : vector<32x128xf32>
    %107 = arith.truncf %106 : vector<32x128xf32> to vector<32x128xbf16>
    %c0_52 = arith.constant 0 : index
    %c0_53 = arith.constant 0 : index
    %108 = vector.load %arg9[%c0_52, %c0_53] : memref<128x128xbf16, #tpu.memory_space<vmem>>, vector<128x128xbf16>
    %cst_54 = arith.constant dense<0.000000e+00> : vector<32x128xf32>
    %109 = tpu.matmul %107, %108, %cst_54 {dimension_numbers = #tpu.dot_dimension_numbers<[1], [0], [0], [1], [0, 0, 1, 1], [], []>} : vector<32x128xbf16>, vector<128x128xbf16>, vector<32x128xf32> -> vector<32x128xf32>
    %c0_55 = arith.constant 0 : index
    %c0_56 = arith.constant 0 : index
    %110 = vector.load %arg10[%c0_55, %c0_56] : memref<1x128xf32, #tpu.memory_space<vmem>>, vector<1x128xf32>
    %111 = vector.broadcast %110 : vector<1x128xf32> to vector<32x128xf32>
    %112 = arith.addf %109, %111 : vector<32x128xf32>
    %cst_57 = arith.constant 0.000000e+00 : f32
    %113 = vector.broadcast %cst_57 : f32 to vector<32x128xf32>
    %114 = arith.maximumf %112, %113 : vector<32x128xf32>
    %115 = arith.addf %114, %70 : vector<32x128xf32>
    %cst_58 = arith.constant 0.000000e+00 : f32
    %116 = vector.broadcast %cst_58 : f32 to vector<32x128xf32>
    %117 = arith.maximumf %115, %116 : vector<32x128xf32>
    %c0_i32_59 = arith.constant 0 : i32
    %118 = vector.broadcast %c0_i32_59 : i32 to vector<32x128xi32>
    %119 = arith.cmpi eq, %16, %118 : vector<32x128xi32>
    %cst_60 = arith.constant 0.000000e+00 : f32
    %120 = vector.broadcast %cst_60 : f32 to vector<32x128xf32>
    %121 = arith.select %119, %117, %120 : vector<32x128xi1>, vector<32x128xf32>
    %122 = arith.truncf %121 : vector<32x128xf32> to vector<32x128xbf16>
    %c0_61 = arith.constant 0 : index
    %c0_62 = arith.constant 0 : index
    %c0_63 = arith.constant 0 : index
    %123 = vector.load %arg11[%c0_61, %c0_62, %c0_63] : memref<16x128x128xbf16, #tpu.memory_space<vmem>>, vector<1x128x128xbf16>
    %124 = vector.shape_cast %123 : vector<1x128x128xbf16> to vector<128x128xbf16>
    %cst_64 = arith.constant dense<0.000000e+00> : vector<32x128xf32>
    %125 = tpu.matmul %122, %124, %cst_64 {dimension_numbers = #tpu.dot_dimension_numbers<[1], [0], [0], [1], [0, 0, 1, 1], [], []>} : vector<32x128xbf16>, vector<128x128xbf16>, vector<32x128xf32> -> vector<32x128xf32>
    %c1_i32_65 = arith.constant 1 : i32
    %126 = vector.broadcast %c1_i32_65 : i32 to vector<32x128xi32>
    %127 = arith.cmpi eq, %16, %126 : vector<32x128xi32>
    %cst_66 = arith.constant 0.000000e+00 : f32
    %128 = vector.broadcast %cst_66 : f32 to vector<32x128xf32>
    %129 = arith.select %127, %117, %128 : vector<32x128xi1>, vector<32x128xf32>
    %130 = arith.truncf %129 : vector<32x128xf32> to vector<32x128xbf16>
    %c1 = arith.constant 1 : index
    %c0_67 = arith.constant 0 : index
    %c0_68 = arith.constant 0 : index
    %131 = vector.load %arg11[%c1, %c0_67, %c0_68] : memref<16x128x128xbf16, #tpu.memory_space<vmem>>, vector<1x128x128xbf16>
    %132 = vector.shape_cast %131 : vector<1x128x128xbf16> to vector<128x128xbf16>
    %cst_69 = arith.constant dense<0.000000e+00> : vector<32x128xf32>
    %133 = tpu.matmul %130, %132, %cst_69 {dimension_numbers = #tpu.dot_dimension_numbers<[1], [0], [0], [1], [0, 0, 1, 1], [], []>} : vector<32x128xbf16>, vector<128x128xbf16>, vector<32x128xf32> -> vector<32x128xf32>
    %134 = arith.addf %125, %133 : vector<32x128xf32>
    %c2_i32_70 = arith.constant 2 : i32
    %135 = vector.broadcast %c2_i32_70 : i32 to vector<32x128xi32>
    %136 = arith.cmpi eq, %16, %135 : vector<32x128xi32>
    %cst_71 = arith.constant 0.000000e+00 : f32
    %137 = vector.broadcast %cst_71 : f32 to vector<32x128xf32>
    %138 = arith.select %136, %117, %137 : vector<32x128xi1>, vector<32x128xf32>
    %139 = arith.truncf %138 : vector<32x128xf32> to vector<32x128xbf16>
    %c2 = arith.constant 2 : index
    %c0_72 = arith.constant 0 : index
    %c0_73 = arith.constant 0 : index
    %140 = vector.load %arg11[%c2, %c0_72, %c0_73] : memref<16x128x128xbf16, #tpu.memory_space<vmem>>, vector<1x128x128xbf16>
    %141 = vector.shape_cast %140 : vector<1x128x128xbf16> to vector<128x128xbf16>
    %cst_74 = arith.constant dense<0.000000e+00> : vector<32x128xf32>
    %142 = tpu.matmul %139, %141, %cst_74 {dimension_numbers = #tpu.dot_dimension_numbers<[1], [0], [0], [1], [0, 0, 1, 1], [], []>} : vector<32x128xbf16>, vector<128x128xbf16>, vector<32x128xf32> -> vector<32x128xf32>
    %143 = arith.addf %134, %142 : vector<32x128xf32>
    %c3_i32 = arith.constant 3 : i32
    %144 = vector.broadcast %c3_i32 : i32 to vector<32x128xi32>
    %145 = arith.cmpi eq, %16, %144 : vector<32x128xi32>
    %cst_75 = arith.constant 0.000000e+00 : f32
    %146 = vector.broadcast %cst_75 : f32 to vector<32x128xf32>
    %147 = arith.select %145, %117, %146 : vector<32x128xi1>, vector<32x128xf32>
    %148 = arith.truncf %147 : vector<32x128xf32> to vector<32x128xbf16>
    %c3 = arith.constant 3 : index
    %c0_76 = arith.constant 0 : index
    %c0_77 = arith.constant 0 : index
    %149 = vector.load %arg11[%c3, %c0_76, %c0_77] : memref<16x128x128xbf16, #tpu.memory_space<vmem>>, vector<1x128x128xbf16>
    %150 = vector.shape_cast %149 : vector<1x128x128xbf16> to vector<128x128xbf16>
    %cst_78 = arith.constant dense<0.000000e+00> : vector<32x128xf32>
    %151 = tpu.matmul %148, %150, %cst_78 {dimension_numbers = #tpu.dot_dimension_numbers<[1], [0], [0], [1], [0, 0, 1, 1], [], []>} : vector<32x128xbf16>, vector<128x128xbf16>, vector<32x128xf32> -> vector<32x128xf32>
    %152 = arith.addf %143, %151 : vector<32x128xf32>
    %c4_i32_79 = arith.constant 4 : i32
    %153 = vector.broadcast %c4_i32_79 : i32 to vector<32x128xi32>
    %154 = arith.cmpi eq, %16, %153 : vector<32x128xi32>
    %cst_80 = arith.constant 0.000000e+00 : f32
    %155 = vector.broadcast %cst_80 : f32 to vector<32x128xf32>
    %156 = arith.select %154, %117, %155 : vector<32x128xi1>, vector<32x128xf32>
    %157 = arith.truncf %156 : vector<32x128xf32> to vector<32x128xbf16>
    %c4 = arith.constant 4 : index
    %c0_81 = arith.constant 0 : index
    %c0_82 = arith.constant 0 : index
    %158 = vector.load %arg11[%c4, %c0_81, %c0_82] : memref<16x128x128xbf16, #tpu.memory_space<vmem>>, vector<1x128x128xbf16>
    %159 = vector.shape_cast %158 : vector<1x128x128xbf16> to vector<128x128xbf16>
    %cst_83 = arith.constant dense<0.000000e+00> : vector<32x128xf32>
    %160 = tpu.matmul %157, %159, %cst_83 {dimension_numbers = #tpu.dot_dimension_numbers<[1], [0], [0], [1], [0, 0, 1, 1], [], []>} : vector<32x128xbf16>, vector<128x128xbf16>, vector<32x128xf32> -> vector<32x128xf32>
    %161 = arith.addf %152, %160 : vector<32x128xf32>
    %c5_i32 = arith.constant 5 : i32
    %162 = vector.broadcast %c5_i32 : i32 to vector<32x128xi32>
    %163 = arith.cmpi eq, %16, %162 : vector<32x128xi32>
    %cst_84 = arith.constant 0.000000e+00 : f32
    %164 = vector.broadcast %cst_84 : f32 to vector<32x128xf32>
    %165 = arith.select %163, %117, %164 : vector<32x128xi1>, vector<32x128xf32>
    %166 = arith.truncf %165 : vector<32x128xf32> to vector<32x128xbf16>
    %c5 = arith.constant 5 : index
    %c0_85 = arith.constant 0 : index
    %c0_86 = arith.constant 0 : index
    %167 = vector.load %arg11[%c5, %c0_85, %c0_86] : memref<16x128x128xbf16, #tpu.memory_space<vmem>>, vector<1x128x128xbf16>
    %168 = vector.shape_cast %167 : vector<1x128x128xbf16> to vector<128x128xbf16>
    %cst_87 = arith.constant dense<0.000000e+00> : vector<32x128xf32>
    %169 = tpu.matmul %166, %168, %cst_87 {dimension_numbers = #tpu.dot_dimension_numbers<[1], [0], [0], [1], [0, 0, 1, 1], [], []>} : vector<32x128xbf16>, vector<128x128xbf16>, vector<32x128xf32> -> vector<32x128xf32>
    %170 = arith.addf %161, %169 : vector<32x128xf32>
    %c6_i32 = arith.constant 6 : i32
    %171 = vector.broadcast %c6_i32 : i32 to vector<32x128xi32>
    %172 = arith.cmpi eq, %16, %171 : vector<32x128xi32>
    %cst_88 = arith.constant 0.000000e+00 : f32
    %173 = vector.broadcast %cst_88 : f32 to vector<32x128xf32>
    %174 = arith.select %172, %117, %173 : vector<32x128xi1>, vector<32x128xf32>
    %175 = arith.truncf %174 : vector<32x128xf32> to vector<32x128xbf16>
    %c6 = arith.constant 6 : index
    %c0_89 = arith.constant 0 : index
    %c0_90 = arith.constant 0 : index
    %176 = vector.load %arg11[%c6, %c0_89, %c0_90] : memref<16x128x128xbf16, #tpu.memory_space<vmem>>, vector<1x128x128xbf16>
    %177 = vector.shape_cast %176 : vector<1x128x128xbf16> to vector<128x128xbf16>
    %cst_91 = arith.constant dense<0.000000e+00> : vector<32x128xf32>
    %178 = tpu.matmul %175, %177, %cst_91 {dimension_numbers = #tpu.dot_dimension_numbers<[1], [0], [0], [1], [0, 0, 1, 1], [], []>} : vector<32x128xbf16>, vector<128x128xbf16>, vector<32x128xf32> -> vector<32x128xf32>
    %179 = arith.addf %170, %178 : vector<32x128xf32>
    %c7_i32 = arith.constant 7 : i32
    %180 = vector.broadcast %c7_i32 : i32 to vector<32x128xi32>
    %181 = arith.cmpi eq, %16, %180 : vector<32x128xi32>
    %cst_92 = arith.constant 0.000000e+00 : f32
    %182 = vector.broadcast %cst_92 : f32 to vector<32x128xf32>
    %183 = arith.select %181, %117, %182 : vector<32x128xi1>, vector<32x128xf32>
    %184 = arith.truncf %183 : vector<32x128xf32> to vector<32x128xbf16>
    %c7 = arith.constant 7 : index
    %c0_93 = arith.constant 0 : index
    %c0_94 = arith.constant 0 : index
    %185 = vector.load %arg11[%c7, %c0_93, %c0_94] : memref<16x128x128xbf16, #tpu.memory_space<vmem>>, vector<1x128x128xbf16>
    %186 = vector.shape_cast %185 : vector<1x128x128xbf16> to vector<128x128xbf16>
    %cst_95 = arith.constant dense<0.000000e+00> : vector<32x128xf32>
    %187 = tpu.matmul %184, %186, %cst_95 {dimension_numbers = #tpu.dot_dimension_numbers<[1], [0], [0], [1], [0, 0, 1, 1], [], []>} : vector<32x128xbf16>, vector<128x128xbf16>, vector<32x128xf32> -> vector<32x128xf32>
    %188 = arith.addf %179, %187 : vector<32x128xf32>
    %c8_i32_96 = arith.constant 8 : i32
    %189 = vector.broadcast %c8_i32_96 : i32 to vector<32x128xi32>
    %190 = arith.cmpi eq, %16, %189 : vector<32x128xi32>
    %cst_97 = arith.constant 0.000000e+00 : f32
    %191 = vector.broadcast %cst_97 : f32 to vector<32x128xf32>
    %192 = arith.select %190, %117, %191 : vector<32x128xi1>, vector<32x128xf32>
    %193 = arith.truncf %192 : vector<32x128xf32> to vector<32x128xbf16>
    %c8 = arith.constant 8 : index
    %c0_98 = arith.constant 0 : index
    %c0_99 = arith.constant 0 : index
    %194 = vector.load %arg11[%c8, %c0_98, %c0_99] : memref<16x128x128xbf16, #tpu.memory_space<vmem>>, vector<1x128x128xbf16>
    %195 = vector.shape_cast %194 : vector<1x128x128xbf16> to vector<128x128xbf16>
    %cst_100 = arith.constant dense<0.000000e+00> : vector<32x128xf32>
    %196 = tpu.matmul %193, %195, %cst_100 {dimension_numbers = #tpu.dot_dimension_numbers<[1], [0], [0], [1], [0, 0, 1, 1], [], []>} : vector<32x128xbf16>, vector<128x128xbf16>, vector<32x128xf32> -> vector<32x128xf32>
    %197 = arith.addf %188, %196 : vector<32x128xf32>
    %c9_i32 = arith.constant 9 : i32
    %198 = vector.broadcast %c9_i32 : i32 to vector<32x128xi32>
    %199 = arith.cmpi eq, %16, %198 : vector<32x128xi32>
    %cst_101 = arith.constant 0.000000e+00 : f32
    %200 = vector.broadcast %cst_101 : f32 to vector<32x128xf32>
    %201 = arith.select %199, %117, %200 : vector<32x128xi1>, vector<32x128xf32>
    %202 = arith.truncf %201 : vector<32x128xf32> to vector<32x128xbf16>
    %c9 = arith.constant 9 : index
    %c0_102 = arith.constant 0 : index
    %c0_103 = arith.constant 0 : index
    %203 = vector.load %arg11[%c9, %c0_102, %c0_103] : memref<16x128x128xbf16, #tpu.memory_space<vmem>>, vector<1x128x128xbf16>
    %204 = vector.shape_cast %203 : vector<1x128x128xbf16> to vector<128x128xbf16>
    %cst_104 = arith.constant dense<0.000000e+00> : vector<32x128xf32>
    %205 = tpu.matmul %202, %204, %cst_104 {dimension_numbers = #tpu.dot_dimension_numbers<[1], [0], [0], [1], [0, 0, 1, 1], [], []>} : vector<32x128xbf16>, vector<128x128xbf16>, vector<32x128xf32> -> vector<32x128xf32>
    %206 = arith.addf %197, %205 : vector<32x128xf32>
    %c10_i32 = arith.constant 10 : i32
    %207 = vector.broadcast %c10_i32 : i32 to vector<32x128xi32>
    %208 = arith.cmpi eq, %16, %207 : vector<32x128xi32>
    %cst_105 = arith.constant 0.000000e+00 : f32
    %209 = vector.broadcast %cst_105 : f32 to vector<32x128xf32>
    %210 = arith.select %208, %117, %209 : vector<32x128xi1>, vector<32x128xf32>
    %211 = arith.truncf %210 : vector<32x128xf32> to vector<32x128xbf16>
    %c10 = arith.constant 10 : index
    %c0_106 = arith.constant 0 : index
    %c0_107 = arith.constant 0 : index
    %212 = vector.load %arg11[%c10, %c0_106, %c0_107] : memref<16x128x128xbf16, #tpu.memory_space<vmem>>, vector<1x128x128xbf16>
    %213 = vector.shape_cast %212 : vector<1x128x128xbf16> to vector<128x128xbf16>
    %cst_108 = arith.constant dense<0.000000e+00> : vector<32x128xf32>
    %214 = tpu.matmul %211, %213, %cst_108 {dimension_numbers = #tpu.dot_dimension_numbers<[1], [0], [0], [1], [0, 0, 1, 1], [], []>} : vector<32x128xbf16>, vector<128x128xbf16>, vector<32x128xf32> -> vector<32x128xf32>
    %215 = arith.addf %206, %214 : vector<32x128xf32>
    %c11_i32 = arith.constant 11 : i32
    %216 = vector.broadcast %c11_i32 : i32 to vector<32x128xi32>
    %217 = arith.cmpi eq, %16, %216 : vector<32x128xi32>
    %cst_109 = arith.constant 0.000000e+00 : f32
    %218 = vector.broadcast %cst_109 : f32 to vector<32x128xf32>
    %219 = arith.select %217, %117, %218 : vector<32x128xi1>, vector<32x128xf32>
    %220 = arith.truncf %219 : vector<32x128xf32> to vector<32x128xbf16>
    %c11 = arith.constant 11 : index
    %c0_110 = arith.constant 0 : index
    %c0_111 = arith.constant 0 : index
    %221 = vector.load %arg11[%c11, %c0_110, %c0_111] : memref<16x128x128xbf16, #tpu.memory_space<vmem>>, vector<1x128x128xbf16>
    %222 = vector.shape_cast %221 : vector<1x128x128xbf16> to vector<128x128xbf16>
    %cst_112 = arith.constant dense<0.000000e+00> : vector<32x128xf32>
    %223 = tpu.matmul %220, %222, %cst_112 {dimension_numbers = #tpu.dot_dimension_numbers<[1], [0], [0], [1], [0, 0, 1, 1], [], []>} : vector<32x128xbf16>, vector<128x128xbf16>, vector<32x128xf32> -> vector<32x128xf32>
    %224 = arith.addf %215, %223 : vector<32x128xf32>
    %c12_i32 = arith.constant 12 : i32
    %225 = vector.broadcast %c12_i32 : i32 to vector<32x128xi32>
    %226 = arith.cmpi eq, %16, %225 : vector<32x128xi32>
    %cst_113 = arith.constant 0.000000e+00 : f32
    %227 = vector.broadcast %cst_113 : f32 to vector<32x128xf32>
    %228 = arith.select %226, %117, %227 : vector<32x128xi1>, vector<32x128xf32>
    %229 = arith.truncf %228 : vector<32x128xf32> to vector<32x128xbf16>
    %c12 = arith.constant 12 : index
    %c0_114 = arith.constant 0 : index
    %c0_115 = arith.constant 0 : index
    %230 = vector.load %arg11[%c12, %c0_114, %c0_115] : memref<16x128x128xbf16, #tpu.memory_space<vmem>>, vector<1x128x128xbf16>
    %231 = vector.shape_cast %230 : vector<1x128x128xbf16> to vector<128x128xbf16>
    %cst_116 = arith.constant dense<0.000000e+00> : vector<32x128xf32>
    %232 = tpu.matmul %229, %231, %cst_116 {dimension_numbers = #tpu.dot_dimension_numbers<[1], [0], [0], [1], [0, 0, 1, 1], [], []>} : vector<32x128xbf16>, vector<128x128xbf16>, vector<32x128xf32> -> vector<32x128xf32>
    %233 = arith.addf %224, %232 : vector<32x128xf32>
    %c13_i32 = arith.constant 13 : i32
    %234 = vector.broadcast %c13_i32 : i32 to vector<32x128xi32>
    %235 = arith.cmpi eq, %16, %234 : vector<32x128xi32>
    %cst_117 = arith.constant 0.000000e+00 : f32
    %236 = vector.broadcast %cst_117 : f32 to vector<32x128xf32>
    %237 = arith.select %235, %117, %236 : vector<32x128xi1>, vector<32x128xf32>
    %238 = arith.truncf %237 : vector<32x128xf32> to vector<32x128xbf16>
    %c13 = arith.constant 13 : index
    %c0_118 = arith.constant 0 : index
    %c0_119 = arith.constant 0 : index
    %239 = vector.load %arg11[%c13, %c0_118, %c0_119] : memref<16x128x128xbf16, #tpu.memory_space<vmem>>, vector<1x128x128xbf16>
    %240 = vector.shape_cast %239 : vector<1x128x128xbf16> to vector<128x128xbf16>
    %cst_120 = arith.constant dense<0.000000e+00> : vector<32x128xf32>
    %241 = tpu.matmul %238, %240, %cst_120 {dimension_numbers = #tpu.dot_dimension_numbers<[1], [0], [0], [1], [0, 0, 1, 1], [], []>} : vector<32x128xbf16>, vector<128x128xbf16>, vector<32x128xf32> -> vector<32x128xf32>
    %242 = arith.addf %233, %241 : vector<32x128xf32>
    %c14_i32_121 = arith.constant 14 : i32
    %243 = vector.broadcast %c14_i32_121 : i32 to vector<32x128xi32>
    %244 = arith.cmpi eq, %16, %243 : vector<32x128xi32>
    %cst_122 = arith.constant 0.000000e+00 : f32
    %245 = vector.broadcast %cst_122 : f32 to vector<32x128xf32>
    %246 = arith.select %244, %117, %245 : vector<32x128xi1>, vector<32x128xf32>
    %247 = arith.truncf %246 : vector<32x128xf32> to vector<32x128xbf16>
    %c14 = arith.constant 14 : index
    %c0_123 = arith.constant 0 : index
    %c0_124 = arith.constant 0 : index
    %248 = vector.load %arg11[%c14, %c0_123, %c0_124] : memref<16x128x128xbf16, #tpu.memory_space<vmem>>, vector<1x128x128xbf16>
    %249 = vector.shape_cast %248 : vector<1x128x128xbf16> to vector<128x128xbf16>
    %cst_125 = arith.constant dense<0.000000e+00> : vector<32x128xf32>
    %250 = tpu.matmul %247, %249, %cst_125 {dimension_numbers = #tpu.dot_dimension_numbers<[1], [0], [0], [1], [0, 0, 1, 1], [], []>} : vector<32x128xbf16>, vector<128x128xbf16>, vector<32x128xf32> -> vector<32x128xf32>
    %251 = arith.addf %242, %250 : vector<32x128xf32>
    %c15_i32_126 = arith.constant 15 : i32
    %252 = vector.broadcast %c15_i32_126 : i32 to vector<32x128xi32>
    %253 = arith.cmpi eq, %16, %252 : vector<32x128xi32>
    %cst_127 = arith.constant 0.000000e+00 : f32
    %254 = vector.broadcast %cst_127 : f32 to vector<32x128xf32>
    %255 = arith.select %253, %117, %254 : vector<32x128xi1>, vector<32x128xf32>
    %256 = arith.truncf %255 : vector<32x128xf32> to vector<32x128xbf16>
    %c15 = arith.constant 15 : index
    %c0_128 = arith.constant 0 : index
    %c0_129 = arith.constant 0 : index
    %257 = vector.load %arg11[%c15, %c0_128, %c0_129] : memref<16x128x128xbf16, #tpu.memory_space<vmem>>, vector<1x128x128xbf16>
    %258 = vector.shape_cast %257 : vector<1x128x128xbf16> to vector<128x128xbf16>
    %cst_130 = arith.constant dense<0.000000e+00> : vector<32x128xf32>
    %259 = tpu.matmul %256, %258, %cst_130 {dimension_numbers = #tpu.dot_dimension_numbers<[1], [0], [0], [1], [0, 0, 1, 1], [], []>} : vector<32x128xbf16>, vector<128x128xbf16>, vector<32x128xf32> -> vector<32x128xf32>
    %260 = arith.addf %251, %259 : vector<32x128xf32>
    %261 = vector.extract_strided_slice %260 {offsets = [0, 0], sizes = [16, 128], strides = [1, 1]} : vector<32x128xf32> to vector<16x128xf32>
    %cst_131 = arith.constant dense<0.000000e+00> : vector<128xf32>
    %262 = vector.multi_reduction <add>, %261, %cst_131 [0] : vector<16x128xf32> to vector<128xf32>
    %263 = vector.shape_cast %262 : vector<128xf32> to vector<1x128xf32>
    %264 = vector.extract_strided_slice %260 {offsets = [16, 0], sizes = [16, 128], strides = [1, 1]} : vector<32x128xf32> to vector<16x128xf32>
    %cst_132 = arith.constant dense<0.000000e+00> : vector<128xf32>
    %265 = vector.multi_reduction <add>, %264, %cst_132 [0] : vector<16x128xf32> to vector<128xf32>
    %266 = vector.shape_cast %265 : vector<128xf32> to vector<1x128xf32>
    %267 = tpu.concatenate %263, %266 in 0 : vector<1x128xf32>, vector<1x128xf32> -> vector<2x128xf32>
    %c0_133 = arith.constant 0 : index
    %c0_134 = arith.constant 0 : index
    %268 = vector.load %arg12[%c0_133, %c0_134] : memref<1x128xf32, #tpu.memory_space<vmem>>, vector<1x128xf32>
    %269 = vector.broadcast %268 : vector<1x128xf32> to vector<2x128xf32>
    %270 = arith.addf %267, %269 : vector<2x128xf32>
    %c0_135 = arith.constant 0 : index
    %c0_136 = arith.constant 0 : index
    %271 = vector.load %arg13[%c0_135, %c0_136] : memref<2x128xf32, #tpu.memory_space<vmem>>, vector<2x128xf32>
    tpu.vector_store %arg13[%c0_135, %c0_136], %270 {strides = array<i32>} : memref<2x128xf32, #tpu.memory_space<vmem>>, vector<2x128xf32>,
    return
  }
}

</mosaic_0001>

<bundles_post_ra>
// kernel: temporal_conv_net.1
= control target key start
LH: loop header
LB: loop body
LE: loop exit
PB: predicated region body
PF: predicated region fallthrough
CT: control target
= control target key end

     0   :  { %18 = vsyncpa [#allocation3], 0  ;;  %s4817_s0 = inlined_call_operand.vmem [shape: f32[32,128], index: 0, kind: input, shape index: {}]   ;;  %s4818_s1 = inlined_call_operand.vmem [shape: bf16[128,128], index: 1, kind: input, shape index: {}]   ;;  %s4819_s2 = inlined_call_operand.vmem [shape: f32[1,128], index: 2, kind: input, shape index: {}]   ;;  %s4820_s3 = inlined_call_operand.vmem [shape: bf16[128,128], index: 3, kind: input, shape index: {}]   ;;  %s4821_s4 = inlined_call_operand.hbm [shape: f32[1,128], index: 4, kind: input, shape index: {}]   ;;  %s4822_s5 = inlined_call_operand.hbm [shape: bf16[128,128], index: 5, kind: input, shape index: {}]   ;;  %s4823_s6 = inlined_call_operand.vmem [shape: f32[1,128], index: 6, kind: input, shape index: {}]   ;;  %s4824_s7 = inlined_call_operand.hbm [shape: bf16[128,128], index: 7, kind: input, shape index: {}]   ;;  %s4825_s8 = inlined_call_operand.vmem [shape: f32[1,128], index: 8, kind: input, shape index: {}]   ;;  %s4826_s9 = inlined_call_operand.hbm [shape: bf16[128,128], index: 9, kind: input, shape index: {}]   ;;  %s4827_s10 = inlined_call_operand.vmem [shape: f32[1,128], index: 10, kind: input, shape index: {}]   ;;  %s4828_s11 = inlined_call_operand.hbm [shape: bf16[16,128,128], index: 11, kind: input, shape index: {}]   ;;  %s4829_s12 = inlined_call_operand.vmem [shape: f32[1,128], index: 12, kind: input, shape index: {}]   ;;  %s4830_s13 = inlined_call_operand.hbm [shape: f32[2,128], index: 13, kind: output, shape index: {}]  }
   0x1   :  { %19 = vsyncpa [#allocation6], 0 }
   0x2   :  { %20 = vsyncpa [#allocation9], 0 }
   0x3   :  { %21 = vsyncpa [#allocation4], 0  ;;  %s4312_s25 = smov [#allocation5]  }
   0x4   :  { %s45_s26 = sshll.u32 %s4312_s25, 4  ;;  %s46_s26 = int_to_ptr.vmem [resolvable:$true] %s45_s26 }
   0x5   :  { %s4192_s27 = scalar_lea.vmem %s46_s26, 1024  ;;  %p4197_p1 = scmp.lt.s32.totalorder %s46_s26, %s46_s26 }
   0x6   :  { %p4193_p0 = scmp.ne.s32.totalorder %s46_s26, %s4192_s27  ;;  %p4198_p2 = scmp.lt.s32.totalorder %s4192_s27, %s4192_s27 }
   0x8   :  { %p4199_p3 = por %p4198_p2, %p4197_p1 }
   0xa   :  { %p4200_p4 = pnand %p4199_p3, %p4193_p0 }
   0xc   :  { %4203 = shalt.err (!%p4200_p4)
}
   0xd   :  { %s4313_s28 = smov 64   ;;  %s4314_s29 = smov 4  }
   0xe   :  { %51 = dma.hbm_to_vmem [thread:$0]  %s4822_s5, 1024, %s46_s26, [#allocation6], %s4313_s28, %s4313_s28, %s4314_s29  }
   0xf   :  { %s4315_s15 = smov [#allocation8]   ;;  %s4316_s17 = smov [#allocation2]  }
  0x10   :  { %s73_s16 = sshll.u32 %s4315_s15, 4  ;;  %s36_s18 = sshll.u32 %s4316_s17, 4  ;;  %s74_s16 = int_to_ptr.vmem [resolvable:$true] %s73_s16  ;;  %s37_s18 = int_to_ptr.vmem [resolvable:$true] %s36_s18 }
  0x11   :  { %s4212_s19 = scalar_lea.vmem %s74_s16, 1024  ;;  %p4217_p6 = scmp.lt.s32.totalorder %s74_s16, %s74_s16 }
  0x12   :  { %p4213_p5 = scmp.ne.s32.totalorder %s74_s16, %s4212_s19  ;;  %p4218_p7 = scmp.lt.s32.totalorder %s4212_s19, %s4212_s19 }
  0x14   :  { %p4219_p8 = por %p4218_p7, %p4217_p6 }
  0x16   :  { %p4220_p9 = pnand %p4219_p8, %p4213_p5 }
  0x18   :  { %4223 = shalt.err (!%p4220_p9)
}
  0x19   :  { %79 = dma.hbm_to_vmem [thread:$0]  %s4826_s9, 1024, %s74_s16, [#allocation9], %s4313_s28, %s4313_s28, %s4314_s29  }
  0x1a   :  { %s4232_s5 = scalar_lea.vmem %s37_s18, 16  ;;  %s4236_s22 = scalar_lea.vmem %s37_s18, 32 }
  0x1b   :  { %p4233_p10 = scmp.ne.s32.totalorder %s37_s18, %s4232_s5  ;;  %p4237_p11 = scmp.lt.s32.totalorder %s37_s18, %s37_s18 }
  0x1c   :  { %p4238_p12 = scmp.lt.s32.totalorder %s4236_s22, %s4232_s5 }
  0x1e   :  { %p4239_p13 = por %p4238_p12, %p4237_p11 }
  0x20   :  { %p4240_p0 = pnand %p4239_p13, %p4233_p10 }
  0x22   :  { %4243 = shalt.err (!%p4240_p0)
}
  0x23   :  { %39 = dma.hbm_to_vmem [thread:$0]  %s4821_s4, 16, %s37_s18, [#allocation3]  }
  0x24   :  { %s4317_s25 = smov [#allocation7]   ;;  %s4318_s27 = smov [#allocation10]  }
  0x25   :  { %s59_s26 = sshll.u32 %s4317_s25, 4  ;;  %s87_s30 = sshll.u32 %s4318_s27, 4  ;;  %s60_s26 = int_to_ptr.vmem [resolvable:$true] %s59_s26  ;;  %s88_s30 = int_to_ptr.vmem [resolvable:$true] %s87_s30 }
  0x26   :  { %s4252_s14 = scalar_lea.vmem %s60_s26, 1024  ;;  %p4257_p2 = scmp.lt.s32.totalorder %s60_s26, %s60_s26 }
  0x27   :  { %p4253_p1 = scmp.ne.s32.totalorder %s60_s26, %s4252_s14  ;;  %p4258_p3 = scmp.lt.s32.totalorder %s4252_s14, %s4252_s14 }
  0x29   :  { %p4259_p4 = por %p4258_p3, %p4257_p2 }
  0x2b   :  { %p4260_p5 = pnand %p4259_p4, %p4253_p1 }
  0x2d   :  { %4263 = shalt.err (!%p4260_p5)
}
  0x2e   :  { %65 = dma.hbm_to_vmem [thread:$0]  %s4824_s7, 1024, %s60_s26, [#allocation6], %s4313_s28, %s4313_s28, %s4314_s29  }
  0x2f   :  { %s4272_s4 = scalar_lea.vmem %s88_s30, 16384  ;;  %p4277_p7 = scmp.lt.s32.totalorder %s88_s30, %s88_s30 }
  0x30   :  { %p4273_p6 = scmp.ne.s32.totalorder %s88_s30, %s4272_s4  ;;  %p4278_p8 = scmp.lt.s32.totalorder %s4272_s4, %s4272_s4 }
  0x32   :  { %p4279_p9 = por %p4278_p8, %p4277_p7 }
  0x34   :  { %p4280_p10 = pnand %p4279_p9, %p4273_p6 }
  0x36   :  { %4283 = shalt.err (!%p4280_p10)
}
  0x37   :  { %93 = dma.hbm_to_vmem [thread:$0]  %s4828_s11, 16384, %s88_s30, [#allocation9], %s4313_s28, %s4313_s28, %s4314_s29  }
  0x38   :  { %4304 = dma.done.wait [#allocation3], 16  }
  0x39   :  { %4305 = vsyncadd [#allocation3], 4294967280 }
  0x3a   :  { %4306 = dma.done.wait [#allocation6], 2048  }
  0x3b   :  { %4307 = vsyncadd [#allocation6], 4294965248 }
  0x3c   :  { %4308 = dma.done.wait [#allocation9], 17408  }
  0x3d   :  { %4309 = vsyncadd [#allocation9], 4294949888  ;;  %v112_v0 = vlaneseq  ;;  %v4430_v5 = vld [vmem:[%s4817_s0 + $0x10] sm:$0xff]  ;;  %v4435_v6 = vld [vmem:[%s4817_s0] sm:$0xff]  ;;  %vm4321_vm15 = vmmov 1   ;;  %s4323_s7 = smov [#allocation11]  }
  0x3e   :  { %v4440_v7 = vld [vmem:[%s4817_s0 + $0x18] sm:$0xff]  ;;  %207 = vrot.lane.b32.xlu1 %v4430_v5, %s4314_s29  ;;  %203 = vrot.lane.b32.xlu0 %v4435_v6, %s4314_s29  ;;  %v4449_v8 = vld [vmem:[%s4817_s0 + $0x8] sm:$0xff]  ;;  %v192_v9 = vrot.slane %v4430_v5, 1  ;;  %v190_v10 = vrot.slane %v4435_v6, 1  ;;  %v175_v27 = vrot.slane %v4430_v5, 7  ;;  %v173_v30 = vrot.slane %v4435_v6, 7 }
  0x3f   :  { %v4421_v1 = vshrl.u32 %v112_v0, 7  ;;  %v4016_v12 = vld [vmem:[%s4818_s1 + $0x38] sm:$0xff]   ;;  %v191_v13 = vrot.slane %v4449_v8, 1  ;;  %v193_v14 = vrot.slane %v4440_v7, 1  ;;  %v4017_v15 = vld [vmem:[%s4818_s1 + $0x30] sm:$0xff]   ;;  %v4018_v21 = vld [vmem:[%s4818_s1 + $0x28] sm:$0xff]  }
  0x40   :  { %3584 = vmatprep.subr.bf16.mxu0 %v4016_v12  ;;  %v4019_v25 = vld [vmem:[%s4818_s1 + $0x20] sm:$0xff]   ;;  %v174_v26 = vrot.slane %v4449_v8, 7  ;;  %v176_v29 = vrot.slane %v4440_v7, 7  ;;  %v4020_v31 = vld [vmem:[%s4818_s1 + $0x18] sm:$0xff]   ;;  %v4021_v32 = vld [vmem:[%s4818_s1 + $0x10] sm:$0xff]   ;;  %s3093_s18 = sshll.u32 %s4323_s7, 4  ;;  %s3094_s18 = int_to_ptr.vmem [resolvable:$true] %s3093_s18 }
  0x41   :  { %v114_v2 = vadd.s32 8, %v4421_v1  ;;  %v116_v3 = vadd.s32 24, %v4421_v1  ;;  %vm194_vm0 = vcmp.lt.s32.totalorder %v4421_v1, 7  ;;  %3585 = vmatpush3.bf16.msra.mxu0 %v4016_v12  ;;  %v115_v17 = vadd.s32 16, %v4421_v1  ;;  %v4022_v33 = vld [vmem:[%s4818_s1 + $0x8] sm:$0xff]   ;;  %v4023_v34 = vld [vmem:[%s4818_s1] sm:$0xff]   ;;  %p4289_p12 = scmp.lt.s32.totalorder %s3094_s18, %s3094_s18 }
  0x42   :  { %v196_v16 = vsel %vm194_vm0, %v191_v13, %v192_v9  ;;  %209 = vrot.lane.b32.xlu1 %v4440_v7, %s4314_s29  ;;  %205 = vrot.lane.b32.xlu0 %v4449_v8, %s4314_s29  ;;  %v197_v19 = vsel %vm194_vm0, %v190_v10, %v191_v13  ;;  %v198_v20 = vsel %vm194_vm0, %v193_v14, %v190_v10  ;;  %v4485_v23 = vand.u32 15, %v4421_v1  ;;  %s4319_s29 = smov 8   ;;  %v4024_v59 = vld [vmem:[#allocation5 + $0x38] sm:$0xff]   ;;  %v4026_v61 = vld [vmem:[#allocation5 + $0x30] sm:$0xff]   ;;  %v4028_v63 = vld [vmem:[#allocation5 + $0x28] sm:$0xff]   ;;  %s4284_s1 = scalar_lea.vmem %s3094_s18, 32 }
  0x43   :  { %v4425_v4 = vand.u32 15, %v114_v2  ;;  %v4454_v11 = vand.u32 15, %v116_v3  ;;  %3586 = vmatprep.subr.bf16.mxu0 %v4017_v15  ;;  %v4482_v22 = vand.u32 15, %v115_v17  ;;  %v195_v28 = vsel %vm194_vm0, %v192_v9, %v193_v14  ;;  %v4025_v60 = vld [vmem:[%s4820_s3 + $0x38] sm:$0xff]   ;;  %v4027_v62 = vld [vmem:[%s4820_s3 + $0x30] sm:$0xff]   ;;  %v4029_v0 = vld [vmem:[%s4820_s3 + $0x28] sm:$0xff]   ;;  %p4285_p11 = scmp.ne.s32.totalorder %s3094_s18, %s4284_s1  ;;  %p4290_p13 = scmp.lt.s32.totalorder %s4284_s1, %s4284_s1 }
  0x44   :  { %vm177_vm3 = vcmp.lt.s32.totalorder %v4421_v1, 1  ;;  %vm169_vm4 = vcmp.ge.s32.totalorder %v4485_v23, 1  ;;  %3604 = vmatprep.subr.bf16.mxu1 %v4025_v60  ;;  %v4030_v2 = vld [vmem:[#allocation5 + $0x20] sm:$0xff]   ;;  %v4032_v9 = vld [vmem:[#allocation5 + $0x18] sm:$0xff]   ;;  %v4034_v12 = vld [vmem:[#allocation5 + $0x10] sm:$0xff]   ;;  %vm682_vm6 = vcmp.lt.s32.totalorder %v4421_v1, 6 }
  0x45   :  { %vm187_vm1 = vcmp.lt.s32.totalorder %v4425_v4, 15  ;;  %vm189_vm2 = vcmp.lt.s32.totalorder %v4454_v11, 15  ;;  %3587 = vmatpush3.bf16.msra.mxu0 %v4017_v15  ;;  %v181_v37 = vsel %vm177_vm3, %v176_v29, %v173_v30  ;;  %v180_v41 = vsel %vm177_vm3, %v173_v30, %v174_v26  ;;  %3605 = vmatpush3.bf16.msra.mxu1 %v4025_v60  ;;  %v4031_v3 = vld [vmem:[%s4820_s3 + $0x20] sm:$0xff]   ;;  %v4033_v10 = vld [vmem:[%s4820_s3 + $0x18] sm:$0xff]   ;;  %v4035_v14 = vld [vmem:[%s4820_s3 + $0x10] sm:$0xff]   ;;  %p4291_p0 = por %p4290_p13, %p4289_p12 }
  0x46   :  { %v200_v18 = vsel %vm187_vm1, %v196_v16, 0.0  ;;  %215 = vrot.lane.b32.xlu0 %v197_v19, %s4319_s29  ;;  %v202_v24 = vsel %vm189_vm2, %v198_v20, 0.0  ;;  %3588 = vmatprep.subr.bf16.mxu0 %v4018_v21  ;;  %v182_v38 = vsel %vm169_vm4, %v181_v37, 0.0  ;;  %vm171_vm5 = vcmp.ge.s32.totalorder %v4482_v22, 1  ;;  %v3104_v13 = vld [vmem:[%s4819_s2] ss:$0 sm:$0xff] }
  0x47   :  { %217 = vrot.lane.b32.xlu1 %v200_v18, %s4319_s29  ;;  %v179_v42 = vsel %vm177_vm3, %v174_v26, %v175_v27  ;;  %v178_v46 = vsel %vm177_vm3, %v175_v27, %v176_v29  ;;  %3606 = vmatprep.subr.bf16.mxu1 %v4027_v62  ;;  %v4036_v15 = vld [vmem:[#allocation5 + $0x8] sm:$0xff]   ;;  %v527_v29 = vpack.c.bf16 %v4449_v8, %v4435_v6  ;;  %vm675_vm7 = vcmp.lt.s32.totalorder %v4425_v4, 14  ;;  %p4292_p1 = pnand %p4291_p0, %p4285_p11 }
  0x48   :  { %v184_v45 = vsel %vm171_vm5, %v179_v42, 0.0  ;;  %vm677_vm8 = vcmp.lt.s32.totalorder %v4454_v11, 14  ;;  %vm665_vm9 = vcmp.lt.s32.totalorder %v4421_v1, 2  ;;  %vm657_vm10 = vcmp.ge.s32.totalorder %v4485_v23, 2 }
  0x49   :  { %3589 = vmatpush3.bf16.msra.mxu0 %v4018_v21  ;;  %3607 = vmatpush3.bf16.msra.mxu1 %v4027_v62  ;;  %v4037_v21 = vld [vmem:[%s4820_s3 + $0x8] sm:$0xff]   ;;  %vm659_vm11 = vcmp.ge.s32.totalorder %v4482_v22, 2  ;;  %vm1049_vm12 = vcmp.eq.s32.totalorder %v4485_v23, 1  ;;  %vm1023_vm13 = vcmp.eq.s32.totalorder %v4485_v23, 0  ;;  %vm1051_vm14 = vcmp.eq.s32.totalorder %v4482_v22, 1 }
  0x4a   :  { %219 = vrot.lane.b32.xlu0 %v195_v28, %s4319_s29  ;;  %3590 = vmatprep.subr.bf16.mxu0 %v4019_v25 }
  0x4b   :  { %221 = vrot.lane.b32.xlu1 %v202_v24, %s4319_s29  ;;  %3608 = vmatprep.subr.bf16.mxu1 %v4029_v0  ;;  %v4038_v24 = vld [vmem:[#allocation5] sm:$0xff]  }
  0x4d   :  { %3591 = vmatpush3.bf16.msra.mxu0 %v4019_v25  ;;  %3609 = vmatpush3.bf16.msra.mxu1 %v4029_v0 }
  0x4e   :  { %3592 = vmatprep.subr.bf16.mxu0 %v4020_v31  ;;  %3610 = vmatprep.subr.bf16.mxu1 %v4031_v3 }
  0x51   :  { %3593 = vmatpush3.bf16.msra.mxu0 %v4020_v31  ;;  %3611 = vmatpush3.bf16.msra.mxu1 %v4031_v3 }
  0x52   :  { %3594 = vmatprep.subr.bf16.mxu0 %v4021_v32  ;;  %3612 = vmatprep.subr.bf16.mxu1 %v4033_v10 }
  0x55   :  { %3595 = vmatpush3.bf16.msra.mxu0 %v4021_v32  ;;  %3613 = vmatpush3.bf16.msra.mxu1 %v4033_v10  ;;  %v4039_v32 = vld [vmem:[%s4820_s3] sm:$0xff]   ;;  %s4320_s3 = smov 16  }
  0x56   :  { %3596 = vmatprep.subr.bf16.mxu0 %v4022_v33  ;;  %3614 = vmatprep.subr.bf16.mxu1 %v4035_v14 }
  0x59   :  { %3597 = vmatpush3.bf16.msra.mxu0 %v4022_v33  ;;  %3615 = vmatpush3.bf16.msra.mxu1 %v4035_v14  ;;  %v528_v33 = vpack.c.bf16 %v4440_v7, %v4430_v5  ;;  %v4042_v14 = vld [vmem:[#allocation7 + $0x28] sm:$0xff]  }
  0x5a   :  { %3598 = vmatprep.subr.bf16.mxu0 %v4023_v34  ;;  %3616 = vmatprep.subr.bf16.mxu1 %v4037_v21 }
  0x5d   :  { %3599 = vmatpush3.bf16.msra.mxu0 %v4023_v34  ;;  %3617 = vmatpush3.bf16.msra.mxu1 %v4037_v21 }
  0x5e   :  { %3624 = vmatprep.subr.bf16.mxu0 %v4024_v59  ;;  %3618 = vmatprep.subr.bf16.mxu1 %v4039_v32 }
  0x61   :  { %3619 = vmatpush3.bf16.msra.mxu1 %v4039_v32 }
  0xb0   :  { %v208_v35 = vpop.permute.xlu1 %207  ;;  %v204_v36 = vpop.permute.xlu0 %203 }
  0xb1   :  { %v211_v43 = vadd.f32 %v204_v36, %v182_v38  ;;  %v213_v51 = vadd.f32 %v208_v35, %v184_v45 }
  0xb4   :  { %v210_v39 = vpop.permute.xlu1 %209  ;;  %v206_v40 = vpop.permute.xlu0 %205 }
  0xb5   :  { %v212_v44 = vadd.f32 %v206_v40, %v180_v41  ;;  %v214_v52 = vadd.f32 %v210_v39, %v178_v46 }
  0xb8   :  { %v216_v48 = vpop.permute.xlu0 %215 }
  0xb9   :  { %v218_v47 = vpop.permute.xlu1 %217  ;;  %v223_v50 = vadd.f32 %v216_v48, %v211_v43 }
  0xba   :  { %v224_v49 = vadd.f32 %v218_v47, %v212_v44 }
  0xbc   :  { %v227_v53 = vpack.c.bf16 %v224_v49, %v223_v50  ;;  %v220_v55 = vpop.permute.xlu0 %219 }
  0xbd   :  { %v222_v54 = vpop.permute.xlu1 %221  ;;  %v225_v57 = vadd.f32 %v220_v55, %v213_v51 }
  0xbe   :  { %v226_v56 = vadd.f32 %v222_v54, %v214_v52  ;;  %3600 = vmatprep.mubr.bf16.mxu0 %v227_v53 }
  0xc0   :  { %v228_v58 = vpack.c.bf16 %v226_v56, %v225_v57 }
  0xc2   :  { %3601 = vmatmul.mubr.bf16.vlgmr.msra.gmra.mxu0 %v228_v58 }
  0xc3   :  { %3625 = vmatpush3.bf16.msra.mxu0 %v4024_v59  ;;  %3640 = vmatprep.mubr.bf16.mxu0 %v527_v29 }
  0xc4   :  { %3626 = vmatprep.subr.bf16.mxu0 %v4026_v61 }
  0xc7   :  { %3627 = vmatpush3.bf16.msra.mxu0 %v4026_v61 }
  0xc8   :  { %3628 = vmatprep.subr.bf16.mxu0 %v4028_v63 }
  0xcb   :  { %3629 = vmatpush3.bf16.msra.mxu0 %v4028_v63 }
  0xcc   :  { %3630 = vmatprep.subr.bf16.mxu0 %v4030_v2 }
  0xcf   :  { %3631 = vmatpush3.bf16.msra.mxu0 %v4030_v2 }
  0xd0   :  { %3632 = vmatprep.subr.bf16.mxu0 %v4032_v9 }
  0xd3   :  { %3633 = vmatpush3.bf16.msra.mxu0 %v4032_v9 }
  0xd4   :  { %3634 = vmatprep.subr.bf16.mxu0 %v4034_v12 }
  0xd7   :  { %3635 = vmatpush3.bf16.msra.mxu0 %v4034_v12  ;;  %v4040_v12 = vld [vmem:[#allocation7 + $0x38] sm:$0xff]  }
  0xd8   :  { %3636 = vmatprep.subr.bf16.mxu0 %v4036_v15  ;;  %3644 = vmatprep.subr.bf16.mxu1 %v4040_v12 }
  0xdb   :  { %3637 = vmatpush3.bf16.msra.mxu0 %v4036_v15 }
  0xdc   :  { %3638 = vmatprep.subr.bf16.mxu0 %v4038_v24 }
  0xdf   :  { %3639 = vmatpush3.bf16.msra.mxu0 %v4038_v24 }
  0xe2   :  { %3641 = vmatmul.mubr.bf16.vlgmr.msra.gmra.mxu0 %v528_v33 }
 0x182   :  { %v3602_v16 = vpop.f32.mrf.mxu0 }
 0x183   :  { %v343_v17 = vadd.f32 %v3602_v16, %v3104_v13  ;;  %v4043_v16 = vld [vmem:[#allocation7 + $0x20] sm:$0xff]  }
 0x184   :  { %v334_v18 = vpop.f32.mrf.mxu0 }
 0x185   :  { %v351_v19 = vmax.f32 %v343_v17, 0.0  ;;  %v335_v20 = vadd.f32 %v3104_v13, %v334_v18  ;;  %v3122_v17 = vld [vmem:[%s4823_s6] ss:$0 sm:$0xff] }
 0x186   :  { %v3603_v25 = vpop.f32.mrf.mxu0 }
 0x187   :  { %v346_v26 = vadd.f32 %v3603_v25, %v3104_v13  ;;  %381 = vrot.lane.b32.xlu0 %v351_v19, %s4319_s29  ;;  %v349_v27 = vmax.f32 %v335_v20, 0.0  ;;  %v355_v36 = vrot.slane %v351_v19, 7  ;;  %v367_v6 = vrot.slane %v351_v19, 1  ;;  %v3113_v19 = vld [vmem:[#allocation2] ss:$0 sm:$0xff] }
 0x188   :  { %v337_v28 = vpop.f32.mrf.mxu0  ;;  %v4044_v20 = vld [vmem:[#allocation7 + $0x18] sm:$0xff]  }
 0x189   :  { %v352_v30 = vmax.f32 %v346_v26, 0.0  ;;  %v338_v31 = vadd.f32 %v3104_v13, %v337_v28  ;;  %v353_v37 = vrot.slane %v349_v27, 7  ;;  %v365_v8 = vrot.slane %v349_v27, 1  ;;  %v4041_v13 = vld [vmem:[#allocation7 + $0x30] sm:$0xff]  }
 0x18b   :  { %v356_v34 = vrot.slane %v352_v30, 7  ;;  %v350_v35 = vmax.f32 %v338_v31, 0.0  ;;  %383 = vrot.lane.b32.xlu1 %v352_v30, %s4319_s29  ;;  %377 = vrot.lane.b32.xlu0 %v349_v27, %s4319_s29  ;;  %v368_v7 = vrot.slane %v352_v30, 1  ;;  %v4045_v30 = vld [vmem:[#allocation7 + $0x10] sm:$0xff]  }
 0x18d   :  { %v354_v38 = vrot.slane %v350_v35, 7  ;;  %v366_v39 = vrot.slane %v350_v35, 1  ;;  %v357_v40 = vsel %vm177_vm3, %v355_v36, %v356_v34  ;;  %v360_v5 = vsel %vm177_vm3, %v356_v34, %v353_v37 }
 0x18e   :  { %v369_v46 = vsel %vm194_vm0, %v367_v6, %v368_v7  ;;  %v372_v47 = vsel %vm194_vm0, %v368_v7, %v365_v8  ;;  %v361_v54 = vsel %vm169_vm4, %v360_v5, 0.0  ;;  %v4046_v5 = vld [vmem:[#allocation7 + $0x8] sm:$0xff]   ;;  %vm4706_vm4 = vmpackc.low %vm4321_vm15, %vm1051_vm14 }
 0x18f   :  { %379 = vrot.lane.b32.xlu1 %v350_v35, %s4319_s29  ;;  %v371_v41 = vsel %vm194_vm0, %v365_v8, %v366_v39  ;;  %v370_v42 = vsel %vm194_vm0, %v366_v39, %v367_v6  ;;  %v358_v43 = vsel %vm177_vm3, %v354_v38, %v355_v36  ;;  %v359_v44 = vsel %vm177_vm3, %v353_v37, %v354_v38  ;;  %vm4697_vm0 = vmpackc.low %vm4321_vm15, %vm1049_vm12 }
 0x190   :  { %389 = vrot.lane.b32.xlu0 %v371_v41, %s4320_s3  ;;  %v374_v45 = vsel %vm187_vm1, %v370_v42, 0.0  ;;  %v376_v48 = vsel %vm189_vm2, %v372_v47, 0.0  ;;  %v363_v60 = vsel %vm171_vm5, %v358_v43, 0.0  ;;  %vm1025_vm1 = vcmp.eq.s32.totalorder %v4482_v22, 0  ;;  %vm3171_vm2 = vmpackc.low %vm4321_vm15, %vm1023_vm13 }
 0x191   :  { %vm1270_vm3 = vcmp.eq.s32.totalorder %v4485_v23, 2  ;;  %vm1398_vm5 = vcmp.eq.s32.totalorder %v4485_v23, 3  ;;  %vm1654_vm13 = vcmp.eq.s32.totalorder %v4485_v23, 5 }
 0x193   :  { %391 = vrot.lane.b32.xlu1 %v374_v45, %s4320_s3 }
 0x194   :  { %393 = vrot.lane.b32.xlu0 %v369_v46, %s4320_s3  ;;  %v4047_v46 = vld [vmem:[#allocation7] sm:$0xff]  }
 0x197   :  { %395 = vrot.lane.b32.xlu1 %v376_v48, %s4320_s3 }
 0x1a2   :  { %v3642_v15 = vpop.f32.mrf.mxu0 }
 0x1a3   :  { %v643_v24 = vadd.f32 %v3642_v15, %v3122_v17 }
 0x1a4   :  { %v634_v18 = vpop.f32.mrf.mxu0 }
 0x1a5   :  { %v635_v32 = vadd.f32 %v3122_v17, %v634_v18 }
 0x1a6   :  { %v3643_v26 = vpop.f32.mrf.mxu0 }
 0x1a7   :  { %v646_v36 = vadd.f32 %v3643_v26, %v3122_v17 }
 0x1a8   :  { %v637_v37 = vpop.f32.mrf.mxu0 }
 0x1a9   :  { %v638_v7 = vadd.f32 %v3122_v17, %v637_v37  ;;  %v4053_v37 = vld [vmem:[#allocation8 + $0x10] sm:$0xff]  }
 0x1f9   :  { %v382_v49 = vpop.permute.xlu0 %381 }
 0x1fa   :  { %v387_v62 = vadd.f32 %v382_v49, %v363_v60 }
 0x1fd   :  { %v384_v50 = vpop.permute.xlu1 %383  ;;  %v378_v51 = vpop.permute.xlu0 %377 }
 0x1fe   :  { %v385_v55 = vadd.f32 %v378_v51, %v361_v54  ;;  %v388_v63 = vadd.f32 %v384_v50, %v357_v40 }
 0x201   :  { %v380_v52 = vpop.permute.xlu1 %379 }
 0x202   :  { %v390_v53 = vpop.permute.xlu0 %389  ;;  %v386_v56 = vadd.f32 %v380_v52, %v359_v44 }
 0x203   :  { %v397_v58 = vadd.f32 %v390_v53, %v385_v55 }
 0x205   :  { %v392_v57 = vpop.permute.xlu1 %391 }
 0x206   :  { %v398_v59 = vadd.f32 %v392_v57, %v386_v56  ;;  %v394_v61 = vpop.permute.xlu0 %393 }
 0x207   :  { %v399_v3 = vadd.f32 %v394_v61, %v387_v62 }
 0x208   :  { %v401_v0 = vpack.c.bf16 %v398_v59, %v397_v58 }
 0x209   :  { %v396_v2 = vpop.permute.xlu1 %395 }
 0x20a   :  { %v400_v9 = vadd.f32 %v396_v2, %v388_v63  ;;  %3620 = vmatprep.mubr.bf16.mxu1 %v401_v0 }
 0x20c   :  { %v402_v10 = vpack.c.bf16 %v400_v9, %v399_v3 }
 0x20e   :  { %3621 = vmatmul.mubr.bf16.vlgmr.msra.gmra.mxu1 %v402_v10 }
 0x20f   :  { %3645 = vmatpush3.bf16.msra.mxu1 %v4040_v12 }
 0x210   :  { %3646 = vmatprep.subr.bf16.mxu1 %v4041_v13 }
 0x213   :  { %3647 = vmatpush3.bf16.msra.mxu1 %v4041_v13 }
 0x214   :  { %3648 = vmatprep.subr.bf16.mxu1 %v4042_v14 }
 0x217   :  { %3649 = vmatpush3.bf16.msra.mxu1 %v4042_v14 }
 0x218   :  { %3650 = vmatprep.subr.bf16.mxu1 %v4043_v16 }
 0x21b   :  { %3651 = vmatpush3.bf16.msra.mxu1 %v4043_v16 }
 0x21c   :  { %3652 = vmatprep.subr.bf16.mxu1 %v4044_v20 }
 0x21f   :  { %3653 = vmatpush3.bf16.msra.mxu1 %v4044_v20 }
 0x220   :  { %3654 = vmatprep.subr.bf16.mxu1 %v4045_v30 }
 0x223   :  { %3655 = vmatpush3.bf16.msra.mxu1 %v4045_v30 }
 0x224   :  { %3656 = vmatprep.subr.bf16.mxu1 %v4046_v5 }
 0x227   :  { %3657 = vmatpush3.bf16.msra.mxu1 %v4046_v5 }
 0x228   :  { %3658 = vmatprep.subr.bf16.mxu1 %v4047_v46 }
 0x22b   :  { %3659 = vmatpush3.bf16.msra.mxu1 %v4047_v46 }
 0x2ce   :  { %v3622_v21 = vpop.f32.mrf.mxu1 }
 0x2cf   :  { %v517_v25 = vadd.f32 %v3622_v21, %v3113_v19 }
 0x2d0   :  { %v508_v27 = vpop.f32.mrf.mxu1 }
 0x2d1   :  { %v525_v28 = vmax.f32 %v517_v25, 0.0  ;;  %v509_v29 = vadd.f32 %v3113_v19, %v508_v27 }
 0x2d2   :  { %v3623_v31 = vpop.f32.mrf.mxu1 }
 0x2d3   :  { %v651_v33 = vadd.f32 %v643_v24, %v525_v28  ;;  %v523_v34 = vmax.f32 %v509_v29, 0.0  ;;  %v520_v35 = vadd.f32 %v3623_v31, %v3113_v19  ;;  %v4048_v31 = vld [vmem:[#allocation8 + $0x38] sm:$0xff]  }
 0x2d4   :  { %v511_v6 = vpop.f32.mrf.mxu1  ;;  %3664 = vmatprep.subr.bf16.mxu0 %v4048_v31 }
 0x2d5   :  { %v4595_v8 = vmax.f32 %v651_v33, 0.0  ;;  %v649_v38 = vadd.f32 %v635_v32, %v523_v34  ;;  %v526_v39 = vmax.f32 %v520_v35, 0.0  ;;  %v512_v40 = vadd.f32 %v3113_v19, %v511_v6  ;;  %v4049_v32 = vld [vmem:[#allocation8 + $0x30] sm:$0xff]   ;;  %3665 = vmatpush3.bf16.msra.mxu0 %v4048_v31  ;;  %v4050_v33 = vld [vmem:[#allocation8 + $0x28] sm:$0xff]   ;;  %v4051_v34 = vld [vmem:[#allocation8 + $0x20] sm:$0xff]  }
 0x2d6   :  { %3666 = vmatprep.subr.bf16.mxu0 %v4049_v32  ;;  %v4052_v35 = vld [vmem:[#allocation8 + $0x18] sm:$0xff]  }
 0x2d7   :  { %v652_v41 = vadd.f32 %v646_v36, %v526_v39  ;;  %v524_v42 = vmax.f32 %v512_v40, 0.0  ;;  %695 = vrot.lane.b32.xlu0 %v4595_v8, %s4319_s29  ;;  %v4599_v43 = vmax.f32 %v649_v38, 0.0  ;;  %v680_v50 = vrot.slane %v4595_v8, 2  ;;  %v3131_v36 = vld [vmem:[%s4825_s8] ss:$0 sm:$0xff] }
 0x2d8   :  { %v663_v3 = vrot.slane %v4595_v8, 6 }
 0x2d9   :  { %v4601_v44 = vmax.f32 %v652_v41, 0.0  ;;  %v650_v45 = vadd.f32 %v638_v7, %v524_v42  ;;  %v678_v48 = vrot.slane %v4599_v43, 2  ;;  %v661_v62 = vrot.slane %v4599_v43, 6  ;;  %3667 = vmatpush3.bf16.msra.mxu0 %v4049_v32  ;;  %v4054_v7 = vld [vmem:[#allocation8 + $0x8] sm:$0xff]  }
 0x2da   :  { %3668 = vmatprep.subr.bf16.mxu0 %v4050_v33 }
 0x2db   :  { %v4603_v47 = vmax.f32 %v650_v45, 0.0  ;;  %697 = vrot.lane.b32.xlu1 %v4601_v44, %s4319_s29  ;;  %691 = vrot.lane.b32.xlu0 %v4599_v43, %s4319_s29  ;;  %v681_v53 = vrot.slane %v4601_v44, 2  ;;  %v664_v59 = vrot.slane %v4601_v44, 6 }
 0x2dd   :  { %v679_v49 = vrot.slane %v4603_v47, 2  ;;  %v683_v55 = vsel %vm682_vm6, %v680_v50, %v681_v53  ;;  %v686_v56 = vsel %vm682_vm6, %v681_v53, %v678_v48  ;;  %v662_v63 = vrot.slane %v4603_v47, 6  ;;  %3669 = vmatpush3.bf16.msra.mxu0 %v4050_v33 }
 0x2de   :  { %v690_v57 = vsel %vm677_vm8, %v686_v56, 0.0  ;;  %v669_v0 = vsel %vm665_vm9, %v664_v59, %v661_v62  ;;  %v666_v20 = vsel %vm665_vm9, %v663_v3, %v664_v59  ;;  %3670 = vmatprep.subr.bf16.mxu0 %v4051_v34 }
 0x2df   :  { %693 = vrot.lane.b32.xlu1 %v4603_v47, %s4319_s29  ;;  %v685_v51 = vsel %vm682_vm6, %v678_v48, %v679_v49  ;;  %v684_v52 = vsel %vm682_vm6, %v679_v49, %v680_v50  ;;  %v670_v10 = vsel %vm657_vm10, %v669_v0, 0.0  ;;  %v668_v12 = vsel %vm665_vm9, %v661_v62, %v662_v63  ;;  %v4055_v50 = vld [vmem:[#allocation8] sm:$0xff]   ;;  %v4057_v62 = vld [vmem:[#allocation10 + $0x38] sm:$0xff]  }
 0x2e0   :  { %703 = vrot.lane.b32.xlu0 %v685_v51, %s4320_s3  ;;  %v688_v54 = vsel %vm675_vm7, %v684_v52, 0.0  ;;  %v667_v13 = vsel %vm665_vm9, %v662_v63, %v663_v3 }
 0x2e1   :  { %v672_v19 = vsel %vm659_vm11, %v667_v13, 0.0  ;;  %3671 = vmatpush3.bf16.msra.mxu0 %v4051_v34 }
 0x2e2   :  { %3672 = vmatprep.subr.bf16.mxu0 %v4052_v35 }
 0x2e3   :  { %705 = vrot.lane.b32.xlu1 %v688_v54, %s4320_s3 }
 0x2e4   :  { %707 = vrot.lane.b32.xlu0 %v683_v55, %s4320_s3 }
 0x2e5   :  { %3673 = vmatpush3.bf16.msra.mxu0 %v4052_v35 }
 0x2e6   :  { %3674 = vmatprep.subr.bf16.mxu0 %v4053_v37 }
 0x2e7   :  { %709 = vrot.lane.b32.xlu1 %v690_v57, %s4320_s3 }
 0x2e9   :  { %3675 = vmatpush3.bf16.msra.mxu0 %v4053_v37 }
 0x2ea   :  { %3676 = vmatprep.subr.bf16.mxu0 %v4054_v7 }
 0x2ed   :  { %3677 = vmatpush3.bf16.msra.mxu0 %v4054_v7  ;;  %v4065_v7 = vld [vmem:[#allocation10 + $0x18] sm:$0xff]  }
 0x2ee   :  { %3678 = vmatprep.subr.bf16.mxu0 %v4055_v50 }
 0x2f1   :  { %3679 = vmatpush3.bf16.msra.mxu0 %v4055_v50  ;;  %v4072_v50 = vld [vmem:[#allocation10 + $0xb8] sm:$0xff]  }
 0x2f2   :  { %3704 = vmatprep.subr.bf16.mxu0 %v4057_v62 }
 0x349   :  { %v696_v58 = vpop.permute.xlu0 %695 }
 0x34a   :  { %v701_v24 = vadd.f32 %v696_v58, %v672_v19 }
 0x34d   :  { %v698_v60 = vpop.permute.xlu1 %697  ;;  %v692_v61 = vpop.permute.xlu0 %691 }
 0x34e   :  { %v699_v14 = vadd.f32 %v692_v61, %v670_v10  ;;  %v702_v25 = vadd.f32 %v698_v60, %v666_v20  ;;  %v4056_v61 = vld [vmem:[#allocation10 + $0x78] sm:$0xff]  }
 0x34f   :  { %3684 = vmatprep.subr.bf16.mxu1 %v4056_v61 }
 0x351   :  { %v694_v2 = vpop.permute.xlu1 %693 }
 0x352   :  { %v704_v9 = vpop.permute.xlu0 %703  ;;  %v700_v15 = vadd.f32 %v694_v2, %v668_v12 }
 0x353   :  { %v711_v17 = vadd.f32 %v704_v9, %v699_v14  ;;  %v4058_v9 = vld [vmem:[#allocation10 + $0x70] sm:$0xff]  }
 0x355   :  { %v706_v16 = vpop.permute.xlu1 %705 }
 0x356   :  { %v712_v18 = vadd.f32 %v706_v16, %v700_v15  ;;  %v708_v21 = vpop.permute.xlu0 %707  ;;  %v4060_v15 = vld [vmem:[#allocation10 + $0x68] sm:$0xff]  }
 0x357   :  { %v713_v28 = vadd.f32 %v708_v21, %v701_v24 }
 0x358   :  { %v715_v26 = vpack.c.bf16 %v712_v18, %v711_v17  ;;  %v4062_v17 = vld [vmem:[#allocation10 + $0x60] sm:$0xff]   ;;  %v4064_v18 = vld [vmem:[#allocation10 + $0x58] sm:$0xff]  }
 0x359   :  { %v710_v27 = vpop.permute.xlu1 %709 }
 0x35a   :  { %v714_v29 = vadd.f32 %v710_v27, %v702_v25  ;;  %3660 = vmatprep.mubr.bf16.mxu1 %v715_v26 }
 0x35c   :  { %v716_v30 = vpack.c.bf16 %v714_v29, %v713_v28 }
 0x35e   :  { %3661 = vmatmul.mubr.bf16.vlgmr.msra.gmra.mxu1 %v716_v30 }
 0x35f   :  { %3685 = vmatpush3.bf16.msra.mxu1 %v4056_v61 }
 0x360   :  { %3686 = vmatprep.subr.bf16.mxu1 %v4058_v9 }
 0x363   :  { %3687 = vmatpush3.bf16.msra.mxu1 %v4058_v9  ;;  %v4122_v9 = vld [vmem:[#allocation10 + $0x230] sm:$0xff]  }
 0x364   :  { %3688 = vmatprep.subr.bf16.mxu1 %v4060_v15 }
 0x367   :  { %3689 = vmatpush3.bf16.msra.mxu1 %v4060_v15 }
 0x368   :  { %3690 = vmatprep.subr.bf16.mxu1 %v4062_v17 }
 0x36b   :  { %3691 = vmatpush3.bf16.msra.mxu1 %v4062_v17 }
 0x36c   :  { %3692 = vmatprep.subr.bf16.mxu1 %v4064_v18 }
 0x36f   :  { %3693 = vmatpush3.bf16.msra.mxu1 %v4064_v18 }
 0x41e   :  { %v3662_v6 = vpop.f32.mrf.mxu1 }
 0x41f   :  { %v831_v38 = vadd.f32 %v3662_v6, %v3131_v36 }
 0x420   :  { %v822_v39 = vpop.f32.mrf.mxu1 }
 0x421   :  { %v839_v40 = vmax.f32 %v831_v38, 0.0  ;;  %v823_v5 = vadd.f32 %v3131_v36, %v822_v39  ;;  %v4059_v39 = vld [vmem:[#allocation10 + $0x30] sm:$0xff]  }
 0x422   :  { %v3663_v41 = vpop.f32.mrf.mxu1 }
 0x423   :  { %v834_v42 = vadd.f32 %v3663_v41, %v3131_v36  ;;  %869 = vrot.lane.b32.xlu0 %v839_v40, %s4319_s29  ;;  %v837_v45 = vmax.f32 %v823_v5, 0.0  ;;  %v843_v53 = vrot.slane %v839_v40, 6  ;;  %v855_v55 = vrot.slane %v839_v40, 2  ;;  %v4061_v40 = vld [vmem:[#allocation10 + $0x28] sm:$0xff]   ;;  %v4063_v5 = vld [vmem:[#allocation10 + $0x20] sm:$0xff]   ;;  %v4066_v41 = vld [vmem:[#allocation10 + $0x50] sm:$0xff]  }
 0x424   :  { %v825_v46 = vpop.f32.mrf.mxu1  ;;  %3694 = vmatprep.subr.bf16.mxu1 %v4066_v41 }
 0x425   :  { %v840_v48 = vmax.f32 %v834_v42, 0.0  ;;  %v826_v49 = vadd.f32 %v3131_v36, %v825_v46  ;;  %v841_v54 = vrot.slane %v837_v45, 6  ;;  %v853_v56 = vrot.slane %v837_v45, 2  ;;  %v4067_v42 = vld [vmem:[#allocation10 + $0x10] sm:$0xff]   ;;  %3695 = vmatpush3.bf16.msra.mxu1 %v4066_v41  ;;  %v4069_v46 = vld [vmem:[#allocation10 + $0x8] sm:$0xff]  }
 0x426   :  { %v4098_v41 = vld [vmem:[#allocation10 + $0x110] sm:$0xff]  }
 0x427   :  { %v844_v51 = vrot.slane %v840_v48, 6  ;;  %v838_v52 = vmax.f32 %v826_v49, 0.0  ;;  %871 = vrot.lane.b32.xlu1 %v840_v48, %s4319_s29  ;;  %865 = vrot.lane.b32.xlu0 %v837_v45, %s4319_s29  ;;  %v856_v63 = vrot.slane %v840_v48, 2  ;;  %v4068_v45 = vld [vmem:[#allocation10 + $0x48] sm:$0xff]   ;;  %v4070_v48 = vld [vmem:[#allocation10 + $0x40] sm:$0xff]  }
 0x428   :  { %3696 = vmatprep.subr.bf16.mxu1 %v4068_v45  ;;  %v4071_v49 = vld [vmem:[#allocation10] sm:$0xff]  }
 0x429   :  { %v842_v57 = vrot.slane %v838_v52, 6  ;;  %v854_v58 = vrot.slane %v838_v52, 2  ;;  %v845_v59 = vsel %vm665_vm9, %v843_v53, %v844_v51  ;;  %v848_v60 = vsel %vm665_vm9, %v844_v51, %v841_v54  ;;  %3697 = vmatpush3.bf16.msra.mxu1 %v4068_v45  ;;  %v4073_v51 = vld [vmem:[#allocation10 + $0xf8] sm:$0xff]   ;;  %v4100_v45 = vld [vmem:[#allocation10 + $0x108] sm:$0xff]  }
 0x42a   :  { %v857_v13 = vsel %vm682_vm6, %v855_v55, %v856_v63  ;;  %v860_v14 = vsel %vm682_vm6, %v856_v63, %v853_v56  ;;  %v849_v25 = vsel %vm657_vm10, %v848_v60, 0.0  ;;  %3698 = vmatprep.subr.bf16.mxu1 %v4070_v48  ;;  %vm1400_vm10 = vcmp.eq.s32.totalorder %v4482_v22, 3 }
 0x42b   :  { %867 = vrot.lane.b32.xlu1 %v838_v52, %s4319_s29  ;;  %v859_v0 = vsel %vm682_vm6, %v853_v56, %v854_v58  ;;  %v858_v2 = vsel %vm682_vm6, %v854_v58, %v855_v55  ;;  %v846_v3 = vsel %vm665_vm9, %v842_v57, %v843_v53  ;;  %v847_v10 = vsel %vm665_vm9, %v841_v54, %v842_v57  ;;  %v3140_v52 = vld [vmem:[%s4827_s10] ss:$0 sm:$0xff]  ;;  %vm3174_vm6 = vmpackc.low %vm4321_vm15, %vm1025_vm1 }
 0x42c   :  { %877 = vrot.lane.b32.xlu0 %v859_v0, %s4320_s3  ;;  %v862_v12 = vsel %vm675_vm7, %v858_v2, 0.0  ;;  %v864_v16 = vsel %vm677_vm8, %v860_v14, 0.0  ;;  %v851_v31 = vsel %vm659_vm11, %v846_v3, 0.0  ;;  %vm3185_vm7 = vmpackc.low %vm4321_vm15, %vm1270_vm3  ;;  %vm1272_vm9 = vcmp.eq.s32.totalorder %v4482_v22, 2 }
 0x42d   :  { %3699 = vmatpush3.bf16.msra.mxu1 %v4070_v48  ;;  %vm3199_vm8 = vmpackc.low %vm4321_vm15, %vm1398_vm5  ;;  %vm1526_vm11 = vcmp.eq.s32.totalorder %v4485_v23, 4  ;;  %v4102_v48 = vld [vmem:[#allocation10 + $0x100] sm:$0xff]   ;;  %vm1656_vm3 = vcmp.eq.s32.totalorder %v4482_v22, 5 }
 0x42e   :  { %3724 = vmatprep.subr.bf16.mxu1 %v4072_v50  ;;  %vm3188_vm12 = vmpackc.low %vm4321_vm15, %vm1272_vm9 }
 0x42f   :  { %879 = vrot.lane.b32.xlu1 %v862_v12, %s4320_s3  ;;  %vm3202_vm14 = vmpackc.low %vm4321_vm15, %vm1400_vm10  ;;  %vm1784_vm10 = vcmp.eq.s32.totalorder %v4482_v22, 6 }
 0x430   :  { %881 = vrot.lane.b32.xlu0 %v857_v13, %s4320_s3  ;;  %v4322_v13 = vmov 0.0   ;;  %vm3227_vm1 = vmpackc.low %vm4321_vm15, %vm1654_vm13 }
 0x431   :  { %vm3244_vm13 = vmpackc.low %vm4321_vm15, %vm1784_vm10 }
 0x433   :  { %883 = vrot.lane.b32.xlu1 %v864_v16, %s4320_s3 }
 0x495   :  { %v870_v19 = vpop.permute.xlu0 %869 }
 0x496   :  { %v875_v33 = vadd.f32 %v870_v19, %v851_v31  ;;  %v4074_v19 = vld [vmem:[#allocation10 + $0xb0] sm:$0xff]   ;;  %v4085_v31 = vld [vmem:[#allocation10 + $0xc8] sm:$0xff]  }
 0x499   :  { %v872_v1 = vpop.permute.xlu1 %871  ;;  %v866_v20 = vpop.permute.xlu0 %865 }
 0x49a   :  { %v873_v26 = vadd.f32 %v866_v20, %v849_v25  ;;  %v876_v34 = vadd.f32 %v872_v1, %v845_v59  ;;  %v4075_v1 = vld [vmem:[#allocation10 + $0xf0] sm:$0xff]   ;;  %v4076_v20 = vld [vmem:[#allocation10 + $0xa8] sm:$0xff]   ;;  %v4079_v25 = vld [vmem:[#allocation10 + $0xe0] sm:$0xff]  }
 0x49d   :  { %v868_v21 = vpop.permute.xlu1 %867 }
 0x49e   :  { %v878_v24 = vpop.permute.xlu0 %877  ;;  %v874_v27 = vadd.f32 %v868_v21, %v847_v10  ;;  %v4077_v21 = vld [vmem:[#allocation10 + $0xe8] sm:$0xff]  }
 0x49f   :  { %v885_v29 = vadd.f32 %v878_v24, %v873_v26  ;;  %v4078_v24 = vld [vmem:[#allocation10 + $0xa0] sm:$0xff]   ;;  %v4080_v26 = vld [vmem:[#allocation10 + $0x98] sm:$0xff]  }
 0x4a1   :  { %v880_v28 = vpop.permute.xlu1 %879 }
 0x4a2   :  { %v886_v30 = vadd.f32 %v880_v28, %v874_v27  ;;  %v882_v32 = vpop.permute.xlu0 %881  ;;  %v4081_v27 = vld [vmem:[#allocation10 + $0xd8] sm:$0xff]   ;;  %v4082_v28 = vld [vmem:[#allocation10 + $0x90] sm:$0xff]  }
 0x4a3   :  { %v887_v37 = vadd.f32 %v882_v32, %v875_v33  ;;  %v4086_v32 = vld [vmem:[#allocation10 + $0x80] sm:$0xff]  }
 0x4a4   :  { %v889_v35 = vpack.c.bf16 %v886_v30, %v885_v29  ;;  %v4083_v29 = vld [vmem:[#allocation10 + $0xd0] sm:$0xff]   ;;  %v4084_v30 = vld [vmem:[#allocation10 + $0x88] sm:$0xff]   ;;  %v4087_v33 = vld [vmem:[#allocation10 + $0xc0] sm:$0xff]  }
 0x4a5   :  { %v884_v36 = vpop.permute.xlu1 %883 }
 0x4a6   :  { %v888_v6 = vadd.f32 %v884_v36, %v876_v34  ;;  %3680 = vmatprep.mubr.bf16.mxu0 %v889_v35  ;;  %v4088_v34 = vld [vmem:[#allocation10 + $0x138] sm:$0xff]   ;;  %v4090_v36 = vld [vmem:[#allocation10 + $0x130] sm:$0xff]  }
 0x4a7   :  { %v4089_v35 = vld [vmem:[#allocation10 + $0x178] sm:$0xff]  }
 0x4a8   :  { %v890_v38 = vpack.c.bf16 %v888_v6, %v887_v37  ;;  %v4091_v37 = vld [vmem:[#allocation10 + $0x170] sm:$0xff]   ;;  %v4092_v6 = vld [vmem:[#allocation10 + $0x128] sm:$0xff]  }
 0x4aa   :  { %3681 = vmatmul.mubr.bf16.vlgmr.msra.gmra.mxu0 %v890_v38  ;;  %v4093_v38 = vld [vmem:[#allocation10 + $0x168] sm:$0xff]  }
 0x4ab   :  { %3705 = vmatpush3.bf16.msra.mxu0 %v4057_v62 }
 0x4ac   :  { %3706 = vmatprep.subr.bf16.mxu0 %v4059_v39 }
 0x4af   :  { %3707 = vmatpush3.bf16.msra.mxu0 %v4059_v39  ;;  %v4094_v39 = vld [vmem:[#allocation10 + $0x120] sm:$0xff]  }
 0x4b0   :  { %3708 = vmatprep.subr.bf16.mxu0 %v4061_v40 }
 0x4b3   :  { %3709 = vmatpush3.bf16.msra.mxu0 %v4061_v40  ;;  %v4095_v40 = vld [vmem:[#allocation10 + $0x160] sm:$0xff]  }
 0x4b4   :  { %3710 = vmatprep.subr.bf16.mxu0 %v4063_v5 }
 0x4b7   :  { %3711 = vmatpush3.bf16.msra.mxu0 %v4063_v5  ;;  %v4096_v5 = vld [vmem:[#allocation10 + $0x118] sm:$0xff]  }
 0x4b8   :  { %3712 = vmatprep.subr.bf16.mxu0 %v4065_v7 }
 0x4bb   :  { %3713 = vmatpush3.bf16.msra.mxu0 %v4065_v7  ;;  %v4097_v7 = vld [vmem:[#allocation10 + $0x158] sm:$0xff]  }
 0x4bc   :  { %3714 = vmatprep.subr.bf16.mxu0 %v4067_v42 }
 0x4bf   :  { %3715 = vmatpush3.bf16.msra.mxu0 %v4067_v42  ;;  %v4099_v42 = vld [vmem:[#allocation10 + $0x150] sm:$0xff]  }
 0x4c0   :  { %3716 = vmatprep.subr.bf16.mxu0 %v4069_v46 }
 0x4c3   :  { %3717 = vmatpush3.bf16.msra.mxu0 %v4069_v46  ;;  %v4101_v46 = vld [vmem:[#allocation10 + $0x148] sm:$0xff]  }
 0x4c4   :  { %3718 = vmatprep.subr.bf16.mxu0 %v4071_v49 }
 0x4c7   :  { %3719 = vmatpush3.bf16.msra.mxu0 %v4071_v49  ;;  %v4103_v49 = vld [vmem:[#allocation10 + $0x140] sm:$0xff]  }
 0x4c8   :  { %3744 = vmatprep.subr.bf16.mxu0 %v4073_v51 }
 0x56a   :  { %v3682_v53 = vpop.f32.mrf.mxu0 }
 0x56b   :  { %v1005_v54 = vadd.f32 %v3682_v53, %v3140_v52  ;;  %v4107_v53 = vld [vmem:[#allocation10 + $0x1f0] sm:$0xff]  }
 0x56c   :  { %v996_v55 = vpop.f32.mrf.mxu0 }
 0x56d   :  { %v1013_v56 = vmax.f32 %v1005_v54, 0.0  ;;  %v997_v57 = vadd.f32 %v3140_v52, %v996_v55  ;;  %v4109_v54 = vld [vmem:[#allocation10 + $0x1e8] sm:$0xff]   ;;  %v4110_v55 = vld [vmem:[#allocation10 + $0x1a0] sm:$0xff]  }
 0x56e   :  { %v3683_v58 = vpop.f32.mrf.mxu0 }
 0x56f   :  { %v1017_v59 = vadd.f32 %v1013_v56, %v4595_v8  ;;  %v1011_v60 = vmax.f32 %v997_v57, 0.0  ;;  %v1008_v61 = vadd.f32 %v3683_v58, %v3140_v52  ;;  %v4111_v56 = vld [vmem:[#allocation10 + $0x1e0] sm:$0xff]   ;;  %v4112_v57 = vld [vmem:[#allocation10 + $0x198] sm:$0xff]  }
 0x570   :  { %v999_v62 = vpop.f32.mrf.mxu0  ;;  %v4113_v58 = vld [vmem:[#allocation10 + $0x1d8] sm:$0xff]  }
 0x571   :  { %v1015_v63 = vadd.f32 %v1011_v60, %v4599_v43  ;;  %v1014_v0 = vmax.f32 %v1008_v61, 0.0  ;;  %v1000_v2 = vadd.f32 %v3140_v52, %v999_v62  ;;  %v1021_v3 = vmax.f32 %v1017_v59, 0.0  ;;  %v4106_v52 = vld [vmem:[#allocation10 + $0x1b0] sm:$0xff]   ;;  %v4116_v61 = vld [vmem:[#allocation10 + $0x188] sm:$0xff]   ;;  %v4127_v43 = vld [vmem:[#allocation10 + $0x260] sm:$0xff]  }
 0x572   :  { %v4114_v59 = vld [vmem:[#allocation10 + $0x190] sm:$0xff]   ;;  %v4117_v62 = vld [vmem:[#allocation10 + $0x1c8] sm:$0xff]  }
 0x573   :  { %v1019_v8 = vmax.f32 %v1015_v63, 0.0  ;;  %v1018_v10 = vadd.f32 %v1014_v0, %v4601_v44  ;;  %v1012_v12 = vmax.f32 %v1000_v2, 0.0  ;;  %v4715_v44 = vpack.c.bf16 %v4322_v13, %v1021_v3  ;;  %v4115_v60 = vld [vmem:[#allocation10 + $0x1d0] sm:$0xff]   ;;  %v4118_v63 = vld [vmem:[#allocation10 + $0x180] sm:$0xff]   ;;  %v4120_v2 = vld [vmem:[#allocation10 + $0x238] sm:$0xff]  }
 0x574   :  { %v4119_v0 = vld [vmem:[#allocation10 + $0x1c0] sm:$0xff]   ;;  %v4121_v3 = vld [vmem:[#allocation10 + $0x278] sm:$0xff]  }
 0x575   :  { %v4711_v14 = vpack.c.bf16 %v4322_v13, %v1019_v8  ;;  %v1022_v15 = vmax.f32 %v1018_v10, 0.0  ;;  %v1016_v16 = vadd.f32 %v1012_v12, %v4603_v47  ;;  %v4124_v8 = vld [vmem:[#allocation10 + $0x228] sm:$0xff]   ;;  %v4126_v12 = vld [vmem:[#allocation10 + $0x220] sm:$0xff]  }
 0x576   :  { %v4125_v10 = vld [vmem:[#allocation10 + $0x268] sm:$0xff]  }
 0x577   :  { %v4718_v17 = vpack.c.bf16 %v1022_v15, %v4322_v13  ;;  %v1020_v18 = vmax.f32 %v1016_v16, 0.0  ;;  %3700 = vmatprep.mubr.msk.bf16.mxu1 %vm4697_vm0, %v4711_v14  ;;  %3720 = vmatprep.mubr.msk.bf16.mxu0 %vm3171_vm2, %v4711_v14  ;;  %vm3213_vm0 = vmpackc.low %vm4321_vm15, %vm1526_vm11  ;;  %vm1528_vm2 = vcmp.eq.s32.totalorder %v4482_v22, 4  ;;  %vm1912_vm11 = vcmp.eq.s32.totalorder %v4482_v22, 7  ;;  %v4123_v22 = vld [vmem:[#allocation10 + $0x270] sm:$0xff]  }
 0x578   :  { %3701 = vmatmul.mubr.msk.bf16.vlgmr.msra.gmra.mxu1 %vm4706_vm4, %v4715_v44  ;;  %3721 = vmatmul.mubr.msk.bf16.vlgmr.msra.gmra.mxu0 %vm3174_vm6, %v4715_v44  ;;  %vm1782_vm4 = vcmp.eq.s32.totalorder %v4485_v23, 6  ;;  %vm3216_vm5 = vmpackc.low %vm4321_vm15, %vm1528_vm2  ;;  %vm1910_vm6 = vcmp.eq.s32.totalorder %v4485_v23, 7  ;;  %v4108_v23 = vld [vmem:[#allocation10 + $0x1a8] sm:$0xff]   ;;  %v4130_v15 = vld [vmem:[#allocation10 + $0x210] sm:$0xff]  }
 0x579   :  { %v4729_v47 = vpack.c.bf16 %v1020_v18, %v4322_v13  ;;  %3725 = vmatpush3.bf16.msra.mxu1 %v4072_v50  ;;  %3745 = vmatpush3.bf16.msra.mxu0 %v4073_v51  ;;  %v4104_v50 = vld [vmem:[#allocation10 + $0x1b8] sm:$0xff]   ;;  %vm3255_vm9 = vmpackc.low %vm4321_vm15, %vm1910_vm6  ;;  %v4131_v16 = vld [vmem:[#allocation10 + $0x250] sm:$0xff]  }
 0x57a   :  { %3740 = vmatprep.mubr.msk.bf16.mxu1 %vm3185_vm7, %v4711_v14  ;;  %3760 = vmatprep.mubr.msk.bf16.mxu0 %vm3199_vm8, %v4711_v14  ;;  %v4105_v51 = vld [vmem:[#allocation10 + $0x1f8] sm:$0xff]   ;;  %vm3230_vm7 = vmpackc.low %vm4321_vm15, %vm1656_vm3  ;;  %v4133_v18 = vld [vmem:[#allocation10 + $0x248] sm:$0xff]   ;;  %vm2041_vm3 = vcmp.eq.s32.totalorder %v4454_v11, 8 }
 0x57b   :  { %3726 = vmatprep.subr.bf16.mxu1 %v4074_v19  ;;  %3746 = vmatprep.subr.bf16.mxu0 %v4075_v1  ;;  %vm3241_vm8 = vmpackc.low %vm4321_vm15, %vm1782_vm4  ;;  %v4128_v13 = vld [vmem:[#allocation10 + $0x218] sm:$0xff]   ;;  %vm2169_vm4 = vcmp.eq.s32.totalorder %v4454_v11, 9 }
 0x57c   :  { %vm3272_vm6 = vmpackc.low %vm2041_vm3, %vm4321_vm15 }
 0x57d   :  { %3727 = vmatpush3.bf16.msra.mxu1 %v4074_v19  ;;  %3747 = vmatpush3.bf16.msra.mxu0 %v4075_v1  ;;  %v4134_v19 = vld [vmem:[#allocation10 + $0x200] sm:$0xff]  }
 0x57e   :  { %3728 = vmatprep.subr.bf16.mxu1 %v4076_v20  ;;  %3748 = vmatprep.subr.bf16.mxu0 %v4077_v21  ;;  %v4135_v1 = vld [vmem:[#allocation10 + $0x240] sm:$0xff]  }
 0x581   :  { %3729 = vmatpush3.bf16.msra.mxu1 %v4076_v20  ;;  %3749 = vmatpush3.bf16.msra.mxu0 %v4077_v21  ;;  %v4136_v20 = vld [vmem:[#allocation10 + $0x2b8] sm:$0xff]  }
 0x582   :  { %3730 = vmatprep.subr.bf16.mxu1 %v4078_v24  ;;  %3750 = vmatprep.subr.bf16.mxu0 %v4079_v25  ;;  %v4137_v21 = vld [vmem:[#allocation10 + $0x2f8] sm:$0xff]  }
 0x585   :  { %3731 = vmatpush3.bf16.msra.mxu1 %v4078_v24  ;;  %3751 = vmatpush3.bf16.msra.mxu0 %v4079_v25  ;;  %v4138_v24 = vld [vmem:[#allocation10 + $0x2b0] sm:$0xff]  }
 0x586   :  { %3732 = vmatprep.subr.bf16.mxu1 %v4080_v26  ;;  %3752 = vmatprep.subr.bf16.mxu0 %v4081_v27  ;;  %v4139_v25 = vld [vmem:[#allocation10 + $0x2f0] sm:$0xff]  }
 0x589   :  { %3733 = vmatpush3.bf16.msra.mxu1 %v4080_v26  ;;  %3753 = vmatpush3.bf16.msra.mxu0 %v4081_v27  ;;  %v4140_v26 = vld [vmem:[#allocation10 + $0x2a8] sm:$0xff]  }
 0x58a   :  { %3734 = vmatprep.subr.bf16.mxu1 %v4082_v28  ;;  %3754 = vmatprep.subr.bf16.mxu0 %v4083_v29  ;;  %v4141_v27 = vld [vmem:[#allocation10 + $0x2e8] sm:$0xff]  }
 0x58d   :  { %3735 = vmatpush3.bf16.msra.mxu1 %v4082_v28  ;;  %3755 = vmatpush3.bf16.msra.mxu0 %v4083_v29  ;;  %v4142_v28 = vld [vmem:[#allocation10 + $0x2a0] sm:$0xff]  }
 0x58e   :  { %3736 = vmatprep.subr.bf16.mxu1 %v4084_v30  ;;  %3756 = vmatprep.subr.bf16.mxu0 %v4085_v31  ;;  %v4143_v29 = vld [vmem:[#allocation10 + $0x2e0] sm:$0xff]  }
 0x591   :  { %3737 = vmatpush3.bf16.msra.mxu1 %v4084_v30  ;;  %3757 = vmatpush3.bf16.msra.mxu0 %v4085_v31  ;;  %v4144_v30 = vld [vmem:[#allocation10 + $0x298] sm:$0xff]  }
 0x592   :  { %3738 = vmatprep.subr.bf16.mxu1 %v4086_v32  ;;  %3758 = vmatprep.subr.bf16.mxu0 %v4087_v33  ;;  %v4145_v31 = vld [vmem:[#allocation10 + $0x2d8] sm:$0xff]  }
 0x595   :  { %3739 = vmatpush3.bf16.msra.mxu1 %v4086_v32  ;;  %3759 = vmatpush3.bf16.msra.mxu0 %v4087_v33  ;;  %v4146_v32 = vld [vmem:[#allocation10 + $0x290] sm:$0xff]  }
 0x596   :  { %3764 = vmatprep.subr.bf16.mxu1 %v4088_v34  ;;  %3784 = vmatprep.subr.bf16.mxu0 %v4089_v35  ;;  %v4147_v33 = vld [vmem:[#allocation10 + $0x2d0] sm:$0xff]  }
 0x598   :  { %3741 = vmatmul.mubr.msk.bf16.vlgmr.msra.gmra.mxu1 %vm3188_vm12, %v4715_v44  ;;  %3761 = vmatmul.mubr.msk.bf16.vlgmr.msra.gmra.mxu0 %vm3202_vm14, %v4715_v44  ;;  %vm2039_vm12 = vcmp.eq.s32.totalorder %v4425_v4, 8  ;;  %vm2167_vm14 = vcmp.eq.s32.totalorder %v4425_v4, 9 }
 0x599   :  { %3765 = vmatpush3.bf16.msra.mxu1 %v4088_v34  ;;  %3780 = vmatprep.mubr.msk.bf16.mxu1 %vm3213_vm0, %v4711_v14  ;;  %vm3258_vm0 = vmpackc.low %vm4321_vm15, %vm1912_vm11  ;;  %v4148_v34 = vld [vmem:[#allocation10 + $0x288] sm:$0xff]   ;;  %vm2297_vm11 = vcmp.eq.s32.totalorder %v4454_v11, 10 }
 0x59a   :  { %3785 = vmatpush3.bf16.msra.mxu0 %v4089_v35  ;;  %3800 = vmatprep.mubr.msk.bf16.mxu0 %vm3227_vm1, %v4711_v14  ;;  %vm3269_vm1 = vmpackc.low %vm2039_vm12, %vm4321_vm15  ;;  %v4149_v35 = vld [vmem:[#allocation10 + $0x2c8] sm:$0xff]   ;;  %vm2425_vm12 = vcmp.eq.s32.totalorder %v4454_v11, 11 }
 0x59b   :  { %3766 = vmatprep.subr.bf16.mxu1 %v4090_v36  ;;  %3786 = vmatprep.subr.bf16.mxu0 %v4091_v37  ;;  %vm3283_vm2 = vmpackc.low %vm2167_vm14, %vm4321_vm15 }
 0x59c   :  { %vm3300_vm14 = vmpackc.low %vm2297_vm11, %vm4321_vm15 }
 0x59d   :  { %3767 = vmatpush3.bf16.msra.mxu1 %v4090_v36  ;;  %v4150_v36 = vld [vmem:[#allocation10 + $0x280] sm:$0xff]  }
 0x59e   :  { %3787 = vmatpush3.bf16.msra.mxu0 %v4091_v37  ;;  %3768 = vmatprep.subr.bf16.mxu1 %v4092_v6  ;;  %v4151_v37 = vld [vmem:[#allocation10 + $0x2c0] sm:$0xff]  }
 0x59f   :  { %3788 = vmatprep.subr.bf16.mxu0 %v4093_v38 }
 0x5a1   :  { %3769 = vmatpush3.bf16.msra.mxu1 %v4092_v6  ;;  %v4152_v6 = vld [vmem:[#allocation10 + $0x338] sm:$0xff]  }
 0x5a2   :  { %3789 = vmatpush3.bf16.msra.mxu0 %v4093_v38  ;;  %3770 = vmatprep.subr.bf16.mxu1 %v4094_v39  ;;  %v4153_v38 = vld [vmem:[#allocation10 + $0x378] sm:$0xff]  }
 0x5a3   :  { %3790 = vmatprep.subr.bf16.mxu0 %v4095_v40 }
 0x5a5   :  { %3771 = vmatpush3.bf16.msra.mxu1 %v4094_v39  ;;  %v4154_v39 = vld [vmem:[#allocation10 + $0x330] sm:$0xff]  }
 0x5a6   :  { %3791 = vmatpush3.bf16.msra.mxu0 %v4095_v40  ;;  %3772 = vmatprep.subr.bf16.mxu1 %v4096_v5  ;;  %v4155_v40 = vld [vmem:[#allocation10 + $0x370] sm:$0xff]  }
 0x5a7   :  { %3792 = vmatprep.subr.bf16.mxu0 %v4097_v7 }
 0x5a9   :  { %3773 = vmatpush3.bf16.msra.mxu1 %v4096_v5  ;;  %v4156_v5 = vld [vmem:[#allocation10 + $0x328] sm:$0xff]  }
 0x5aa   :  { %3793 = vmatpush3.bf16.msra.mxu0 %v4097_v7  ;;  %3774 = vmatprep.subr.bf16.mxu1 %v4098_v41  ;;  %v4157_v7 = vld [vmem:[#allocation10 + $0x368] sm:$0xff]  }
 0x5ab   :  { %3794 = vmatprep.subr.bf16.mxu0 %v4099_v42 }
 0x5ad   :  { %3775 = vmatpush3.bf16.msra.mxu1 %v4098_v41  ;;  %v4158_v41 = vld [vmem:[#allocation10 + $0x320] sm:$0xff]  }
 0x5ae   :  { %3795 = vmatpush3.bf16.msra.mxu0 %v4099_v42  ;;  %3776 = vmatprep.subr.bf16.mxu1 %v4100_v45  ;;  %v4159_v42 = vld [vmem:[#allocation10 + $0x360] sm:$0xff]  }
 0x5af   :  { %3796 = vmatprep.subr.bf16.mxu0 %v4101_v46 }
 0x5b1   :  { %3777 = vmatpush3.bf16.msra.mxu1 %v4100_v45  ;;  %v4160_v45 = vld [vmem:[#allocation10 + $0x318] sm:$0xff]  }
 0x5b2   :  { %3797 = vmatpush3.bf16.msra.mxu0 %v4101_v46  ;;  %3778 = vmatprep.subr.bf16.mxu1 %v4102_v48  ;;  %v4161_v46 = vld [vmem:[#allocation10 + $0x358] sm:$0xff]  }
 0x5b3   :  { %3798 = vmatprep.subr.bf16.mxu0 %v4103_v49 }
 0x5b5   :  { %3779 = vmatpush3.bf16.msra.mxu1 %v4102_v48  ;;  %v4162_v48 = vld [vmem:[#allocation10 + $0x310] sm:$0xff]  }
 0x5b6   :  { %3799 = vmatpush3.bf16.msra.mxu0 %v4103_v49  ;;  %3804 = vmatprep.subr.bf16.mxu1 %v4104_v50  ;;  %v4163_v49 = vld [vmem:[#allocation10 + $0x350] sm:$0xff]  }
 0x5b7   :  { %3824 = vmatprep.subr.bf16.mxu0 %v4105_v51 }
 0x5b8   :  { %3781 = vmatmul.mubr.msk.bf16.vlgmr.msra.gmra.mxu1 %vm3216_vm5, %v4715_v44  ;;  %vm2295_vm5 = vcmp.eq.s32.totalorder %v4425_v4, 10 }
 0x5b9   :  { %3801 = vmatmul.mubr.msk.bf16.vlgmr.msra.gmra.mxu0 %vm3230_vm7, %v4715_v44  ;;  %3805 = vmatpush3.bf16.msra.mxu1 %v4104_v50  ;;  %vm2423_vm7 = vcmp.eq.s32.totalorder %v4425_v4, 11  ;;  %v4164_v50 = vld [vmem:[#allocation10 + $0x308] sm:$0xff]  }
 0x5ba   :  { %3820 = vmatprep.mubr.msk.bf16.mxu1 %vm3241_vm8, %v4711_v14  ;;  %3825 = vmatpush3.bf16.msra.mxu0 %v4105_v51  ;;  %vm3286_vm8 = vmpackc.low %vm2169_vm4, %vm4321_vm15  ;;  %v4165_v51 = vld [vmem:[#allocation10 + $0x348] sm:$0xff]   ;;  %vm2553_vm4 = vcmp.eq.s32.totalorder %v4454_v11, 12 }
 0x5bb   :  { %3840 = vmatprep.mubr.msk.bf16.mxu0 %vm3255_vm9, %v4711_v14  ;;  %3806 = vmatprep.subr.bf16.mxu1 %v4106_v52  ;;  %v4129_v14 = vld [vmem:[#allocation10 + $0x258] sm:$0xff]   ;;  %vm3297_vm9 = vmpackc.low %vm2295_vm5, %vm4321_vm15  ;;  %vm2681_vm5 = vcmp.eq.s32.totalorder %v4454_v11, 13 }
 0x5bc   :  { %3826 = vmatprep.subr.bf16.mxu0 %v4107_v53  ;;  %vm3311_vm10 = vmpackc.low %vm2423_vm7, %vm4321_vm15 }
 0x5bd   :  { %3807 = vmatpush3.bf16.msra.mxu1 %v4106_v52  ;;  %v4166_v52 = vld [vmem:[#allocation10 + $0x300] sm:$0xff]   ;;  %vm3328_vm7 = vmpackc.low %vm2553_vm4, %vm4321_vm15 }
 0x5be   :  { %3827 = vmatpush3.bf16.msra.mxu0 %v4107_v53  ;;  %3808 = vmatprep.subr.bf16.mxu1 %v4108_v23  ;;  %v4167_v53 = vld [vmem:[#allocation10 + $0x340] sm:$0xff]  }
 0x5bf   :  { %3828 = vmatprep.subr.bf16.mxu0 %v4109_v54 }
 0x5c1   :  { %3809 = vmatpush3.bf16.msra.mxu1 %v4108_v23  ;;  %v4168_v23 = vld [vmem:[#allocation10 + $0x3b8] sm:$0xff]  }
 0x5c2   :  { %3829 = vmatpush3.bf16.msra.mxu0 %v4109_v54  ;;  %3810 = vmatprep.subr.bf16.mxu1 %v4110_v55  ;;  %v4169_v54 = vld [vmem:[#allocation10 + $0x3f8] sm:$0xff]  }
 0x5c3   :  { %3830 = vmatprep.subr.bf16.mxu0 %v4111_v56 }
 0x5c5   :  { %3811 = vmatpush3.bf16.msra.mxu1 %v4110_v55  ;;  %v4170_v55 = vld [vmem:[#allocation10 + $0x3b0] sm:$0xff]  }
 0x5c6   :  { %3831 = vmatpush3.bf16.msra.mxu0 %v4111_v56  ;;  %3812 = vmatprep.subr.bf16.mxu1 %v4112_v57  ;;  %v4171_v56 = vld [vmem:[#allocation10 + $0x3f0] sm:$0xff]  }
 0x5c7   :  { %3832 = vmatprep.subr.bf16.mxu0 %v4113_v58 }
 0x5c9   :  { %3813 = vmatpush3.bf16.msra.mxu1 %v4112_v57  ;;  %v4173_v57 = vld [vmem:[#allocation10 + $0x3e8] sm:$0xff]  }
 0x5ca   :  { %3833 = vmatpush3.bf16.msra.mxu0 %v4113_v58  ;;  %3814 = vmatprep.subr.bf16.mxu1 %v4114_v59  ;;  %v4174_v58 = vld [vmem:[#allocation10 + $0x3a0] sm:$0xff]  }
 0x5cb   :  { %3834 = vmatprep.subr.bf16.mxu0 %v4115_v60 }
 0x5cd   :  { %3815 = vmatpush3.bf16.msra.mxu1 %v4114_v59  ;;  %v4175_v59 = vld [vmem:[#allocation10 + $0x3e0] sm:$0xff]  }
 0x5ce   :  { %3835 = vmatpush3.bf16.msra.mxu0 %v4115_v60  ;;  %3816 = vmatprep.subr.bf16.mxu1 %v4116_v61  ;;  %v4176_v60 = vld [vmem:[#allocation10 + $0x398] sm:$0xff]  }
 0x5cf   :  { %3836 = vmatprep.subr.bf16.mxu0 %v4117_v62 }
 0x5d1   :  { %3817 = vmatpush3.bf16.msra.mxu1 %v4116_v61  ;;  %v4177_v61 = vld [vmem:[#allocation10 + $0x3d8] sm:$0xff]  }
 0x5d2   :  { %3837 = vmatpush3.bf16.msra.mxu0 %v4117_v62  ;;  %3818 = vmatprep.subr.bf16.mxu1 %v4118_v63  ;;  %v4178_v62 = vld [vmem:[#allocation10 + $0x390] sm:$0xff]  }
 0x5d3   :  { %3838 = vmatprep.subr.bf16.mxu0 %v4119_v0 }
 0x5d5   :  { %3819 = vmatpush3.bf16.msra.mxu1 %v4118_v63  ;;  %v4180_v63 = vld [vmem:[#allocation10 + $0x388] sm:$0xff]  }
 0x5d6   :  { %3839 = vmatpush3.bf16.msra.mxu0 %v4119_v0  ;;  %3844 = vmatprep.subr.bf16.mxu1 %v4120_v2  ;;  %v4181_v0 = vld [vmem:[#allocation10 + $0x3c8] sm:$0xff]  }
 0x5d7   :  { %3864 = vmatprep.subr.bf16.mxu0 %v4121_v3 }
 0x5d8   :  { %3821 = vmatmul.mubr.msk.bf16.vlgmr.msra.gmra.mxu1 %vm3244_vm13, %v4715_v44  ;;  %vm2551_vm13 = vcmp.eq.s32.totalorder %v4425_v4, 12 }
 0x5d9   :  { %3841 = vmatmul.mubr.msk.bf16.vlgmr.msra.gmra.mxu0 %vm3258_vm0, %v4715_v44  ;;  %3845 = vmatpush3.bf16.msra.mxu1 %v4120_v2  ;;  %v4132_v44 = vld [vmem:[#allocation10 + $0x208] sm:$0xff]   ;;  %vm2679_vm0 = vcmp.eq.s32.totalorder %v4425_v4, 13  ;;  %v4182_v2 = vld [vmem:[#allocation10 + $0x380] sm:$0xff]  }
 0x5da   :  { %3860 = vmatprep.mubr.msk.bf16.mxu1 %vm3269_vm1, %v4729_v47  ;;  %3865 = vmatpush3.bf16.msra.mxu0 %v4121_v3  ;;  %vm3314_vm1 = vmpackc.low %vm2425_vm12, %vm4321_vm15  ;;  %v4183_v3 = vld [vmem:[#allocation10 + $0x3c0] sm:$0xff]   ;;  %vm2809_vm12 = vcmp.eq.s32.totalorder %v4454_v11, 14 }
 0x5db   :  { %3880 = vmatprep.mubr.msk.bf16.mxu0 %vm3283_vm2, %v4729_v47  ;;  %3846 = vmatprep.subr.bf16.mxu1 %v4122_v9  ;;  %vm3325_vm2 = vmpackc.low %vm2551_vm13, %vm4321_vm15  ;;  %vm2937_vm13 = vcmp.eq.s32.totalorder %v4454_v11, 15 }
 0x5dc   :  { %3866 = vmatprep.subr.bf16.mxu0 %v4123_v22  ;;  %vm3339_vm3 = vmpackc.low %vm2679_vm0, %vm4321_vm15 }
 0x5dd   :  { %3847 = vmatpush3.bf16.msra.mxu1 %v4122_v9  ;;  %vm3370_vm0 = vmpackc.low %vm2937_vm13, %vm4321_vm15 }
 0x5de   :  { %3867 = vmatpush3.bf16.msra.mxu0 %v4123_v22  ;;  %3848 = vmatprep.subr.bf16.mxu1 %v4124_v8 }
 0x5df   :  { %3868 = vmatprep.subr.bf16.mxu0 %v4125_v10 }
 0x5e1   :  { %3849 = vmatpush3.bf16.msra.mxu1 %v4124_v8 }
 0x5e2   :  { %3869 = vmatpush3.bf16.msra.mxu0 %v4125_v10  ;;  %3850 = vmatprep.subr.bf16.mxu1 %v4126_v12 }
 0x5e3   :  { %3870 = vmatprep.subr.bf16.mxu0 %v4127_v43 }
 0x5e5   :  { %3851 = vmatpush3.bf16.msra.mxu1 %v4126_v12 }
 0x5e6   :  { %3871 = vmatpush3.bf16.msra.mxu0 %v4127_v43  ;;  %3852 = vmatprep.subr.bf16.mxu1 %v4128_v13 }
 0x5e7   :  { %3872 = vmatprep.subr.bf16.mxu0 %v4129_v14 }
 0x5e9   :  { %3853 = vmatpush3.bf16.msra.mxu1 %v4128_v13 }
 0x5ea   :  { %3873 = vmatpush3.bf16.msra.mxu0 %v4129_v14  ;;  %3854 = vmatprep.subr.bf16.mxu1 %v4130_v15 }
 0x5eb   :  { %3874 = vmatprep.subr.bf16.mxu0 %v4131_v16 }
 0x5ed   :  { %3855 = vmatpush3.bf16.msra.mxu1 %v4130_v15 }
 0x5ee   :  { %3875 = vmatpush3.bf16.msra.mxu0 %v4131_v16  ;;  %3856 = vmatprep.subr.bf16.mxu1 %v4132_v44 }
 0x5ef   :  { %3876 = vmatprep.subr.bf16.mxu0 %v4133_v18 }
 0x5f1   :  { %3857 = vmatpush3.bf16.msra.mxu1 %v4132_v44 }
 0x5f2   :  { %3877 = vmatpush3.bf16.msra.mxu0 %v4133_v18  ;;  %3858 = vmatprep.subr.bf16.mxu1 %v4134_v19 }
 0x5f3   :  { %3878 = vmatprep.subr.bf16.mxu0 %v4135_v1 }
 0x5f5   :  { %3859 = vmatpush3.bf16.msra.mxu1 %v4134_v19 }
 0x5f6   :  { %3879 = vmatpush3.bf16.msra.mxu0 %v4135_v1  ;;  %3884 = vmatprep.subr.bf16.mxu1 %v4136_v20 }
 0x5f7   :  { %3904 = vmatprep.subr.bf16.mxu0 %v4137_v21 }
 0x5f8   :  { %3861 = vmatmul.mubr.msk.bf16.vlgmr.msra.gmra.mxu1 %vm3272_vm6, %v4718_v17  ;;  %vm2807_vm6 = vcmp.eq.s32.totalorder %v4425_v4, 14 }
 0x5f9   :  { %3881 = vmatmul.mubr.msk.bf16.vlgmr.msra.gmra.mxu0 %vm3286_vm8, %v4718_v17  ;;  %3885 = vmatpush3.bf16.msra.mxu1 %v4136_v20  ;;  %vm2935_vm8 = vcmp.eq.s32.totalorder %v4425_v4, 15  ;;  %v4172_v4 = vld [vmem:[#allocation10 + $0x3a8] sm:$0xff]  }
 0x5fa   :  { %3900 = vmatprep.mubr.msk.bf16.mxu1 %vm3297_vm9, %v4729_v47  ;;  %3905 = vmatpush3.bf16.msra.mxu0 %v4137_v21  ;;  %vm3342_vm9 = vmpackc.low %vm2681_vm5, %vm4321_vm15 }
 0x5fb   :  { %3920 = vmatprep.mubr.msk.bf16.mxu0 %vm3311_vm10, %v4729_v47  ;;  %3886 = vmatprep.subr.bf16.mxu1 %v4138_v24  ;;  %vm3353_vm10 = vmpackc.low %vm2807_vm6, %vm4321_vm15 }
 0x5fc   :  { %3906 = vmatprep.subr.bf16.mxu0 %v4139_v25  ;;  %vm3367_vm11 = vmpackc.low %vm2935_vm8, %vm4321_vm15 }
 0x5fd   :  { %3887 = vmatpush3.bf16.msra.mxu1 %v4138_v24 }
 0x5fe   :  { %3907 = vmatpush3.bf16.msra.mxu0 %v4139_v25  ;;  %3888 = vmatprep.subr.bf16.mxu1 %v4140_v26 }
 0x5ff   :  { %3908 = vmatprep.subr.bf16.mxu0 %v4141_v27 }
 0x601   :  { %3889 = vmatpush3.bf16.msra.mxu1 %v4140_v26 }
 0x602   :  { %3909 = vmatpush3.bf16.msra.mxu0 %v4141_v27  ;;  %3890 = vmatprep.subr.bf16.mxu1 %v4142_v28 }
 0x603   :  { %3910 = vmatprep.subr.bf16.mxu0 %v4143_v29 }
 0x605   :  { %3891 = vmatpush3.bf16.msra.mxu1 %v4142_v28 }
 0x606   :  { %3911 = vmatpush3.bf16.msra.mxu0 %v4143_v29  ;;  %3892 = vmatprep.subr.bf16.mxu1 %v4144_v30 }
 0x607   :  { %3912 = vmatprep.subr.bf16.mxu0 %v4145_v31 }
 0x609   :  { %3893 = vmatpush3.bf16.msra.mxu1 %v4144_v30 }
 0x60a   :  { %3913 = vmatpush3.bf16.msra.mxu0 %v4145_v31  ;;  %3894 = vmatprep.subr.bf16.mxu1 %v4146_v32 }
 0x60b   :  { %3914 = vmatprep.subr.bf16.mxu0 %v4147_v33 }
 0x60d   :  { %3895 = vmatpush3.bf16.msra.mxu1 %v4146_v32 }
 0x60e   :  { %3915 = vmatpush3.bf16.msra.mxu0 %v4147_v33  ;;  %3896 = vmatprep.subr.bf16.mxu1 %v4148_v34 }
 0x60f   :  { %3916 = vmatprep.subr.bf16.mxu0 %v4149_v35 }
 0x611   :  { %3897 = vmatpush3.bf16.msra.mxu1 %v4148_v34 }
 0x612   :  { %3917 = vmatpush3.bf16.msra.mxu0 %v4149_v35  ;;  %3898 = vmatprep.subr.bf16.mxu1 %v4150_v36 }
 0x613   :  { %3918 = vmatprep.subr.bf16.mxu0 %v4151_v37 }
 0x615   :  { %3899 = vmatpush3.bf16.msra.mxu1 %v4150_v36 }
 0x616   :  { %3919 = vmatpush3.bf16.msra.mxu0 %v4151_v37  ;;  %3924 = vmatprep.subr.bf16.mxu1 %v4152_v6 }
 0x617   :  { %3944 = vmatprep.subr.bf16.mxu0 %v4153_v38 }
 0x618   :  { %3901 = vmatmul.mubr.msk.bf16.vlgmr.msra.gmra.mxu1 %vm3300_vm14, %v4718_v17  ;;  %vm3356_vm14 = vmpackc.low %vm2809_vm12, %vm4321_vm15  ;;  %vm3076_vm15 = vcmask 1040384  }
 0x619   :  { %3921 = vmatmul.mubr.msk.bf16.vlgmr.msra.gmra.mxu0 %vm3314_vm1, %v4718_v17  ;;  %3925 = vmatpush3.bf16.msra.mxu1 %v4152_v6 }
 0x61a   :  { %3940 = vmatprep.mubr.msk.bf16.mxu1 %vm3325_vm2, %v4729_v47  ;;  %3945 = vmatpush3.bf16.msra.mxu0 %v4153_v38 }
 0x61b   :  { %3960 = vmatprep.mubr.msk.bf16.mxu0 %vm3339_vm3, %v4729_v47  ;;  %3926 = vmatprep.subr.bf16.mxu1 %v4154_v39 }
 0x61c   :  { %3946 = vmatprep.subr.bf16.mxu0 %v4155_v40 }
 0x61d   :  { %3927 = vmatpush3.bf16.msra.mxu1 %v4154_v39 }
 0x61e   :  { %3947 = vmatpush3.bf16.msra.mxu0 %v4155_v40  ;;  %3928 = vmatprep.subr.bf16.mxu1 %v4156_v5 }
 0x61f   :  { %3948 = vmatprep.subr.bf16.mxu0 %v4157_v7 }
 0x621   :  { %3929 = vmatpush3.bf16.msra.mxu1 %v4156_v5 }
 0x622   :  { %3949 = vmatpush3.bf16.msra.mxu0 %v4157_v7  ;;  %3930 = vmatprep.subr.bf16.mxu1 %v4158_v41 }
 0x623   :  { %3950 = vmatprep.subr.bf16.mxu0 %v4159_v42 }
 0x625   :  { %3931 = vmatpush3.bf16.msra.mxu1 %v4158_v41 }
 0x626   :  { %3951 = vmatpush3.bf16.msra.mxu0 %v4159_v42  ;;  %3932 = vmatprep.subr.bf16.mxu1 %v4160_v45 }
 0x627   :  { %3952 = vmatprep.subr.bf16.mxu0 %v4161_v46 }
 0x629   :  { %3933 = vmatpush3.bf16.msra.mxu1 %v4160_v45 }
 0x62a   :  { %3953 = vmatpush3.bf16.msra.mxu0 %v4161_v46  ;;  %3934 = vmatprep.subr.bf16.mxu1 %v4162_v48 }
 0x62b   :  { %3954 = vmatprep.subr.bf16.mxu0 %v4163_v49 }
 0x62d   :  { %3935 = vmatpush3.bf16.msra.mxu1 %v4162_v48 }
 0x62e   :  { %3955 = vmatpush3.bf16.msra.mxu0 %v4163_v49  ;;  %3936 = vmatprep.subr.bf16.mxu1 %v4164_v50 }
 0x62f   :  { %3956 = vmatprep.subr.bf16.mxu0 %v4165_v51 }
 0x631   :  { %3937 = vmatpush3.bf16.msra.mxu1 %v4164_v50 }
 0x632   :  { %3957 = vmatpush3.bf16.msra.mxu0 %v4165_v51  ;;  %3938 = vmatprep.subr.bf16.mxu1 %v4166_v52 }
 0x633   :  { %3958 = vmatprep.subr.bf16.mxu0 %v4167_v53 }
 0x635   :  { %3939 = vmatpush3.bf16.msra.mxu1 %v4166_v52 }
 0x636   :  { %3959 = vmatpush3.bf16.msra.mxu0 %v4167_v53  ;;  %3964 = vmatprep.subr.bf16.mxu1 %v4168_v23 }
 0x637   :  { %3984 = vmatprep.subr.bf16.mxu0 %v4169_v54 }
 0x638   :  { %3941 = vmatmul.mubr.msk.bf16.vlgmr.msra.gmra.mxu1 %vm3328_vm7, %v4718_v17  ;;  %v3702_v9 = vpop.f32.mrf.mxu1  ;;  %v3722_v22 = vpop.f32.mrf.mxu0 }
 0x639   :  { %3961 = vmatmul.mubr.msk.bf16.vlgmr.msra.gmra.mxu0 %vm3342_vm9, %v4718_v17  ;;  %3965 = vmatpush3.bf16.msra.mxu1 %v4168_v23  ;;  %v1264_v5 = vadd.f32 %v3722_v22, %v3702_v9 }
 0x63a   :  { %3980 = vmatprep.mubr.msk.bf16.mxu1 %vm3353_vm10, %v4729_v47  ;;  %3985 = vmatpush3.bf16.msra.mxu0 %v4169_v54  ;;  %v1158_v8 = vpop.f32.mrf.mxu1  ;;  %v1255_v10 = vpop.f32.mrf.mxu0 }
 0x63b   :  { %4000 = vmatprep.mubr.msk.bf16.mxu0 %vm3367_vm11, %v4729_v47  ;;  %3966 = vmatprep.subr.bf16.mxu1 %v4170_v55  ;;  %v4179_v47 = vld [vmem:[#allocation10 + $0x3d0] sm:$0xff]   ;;  %v1256_v41 = vadd.f32 %v1255_v10, %v1158_v8 }
 0x63c   :  { %3986 = vmatprep.subr.bf16.mxu0 %v4171_v56  ;;  %v3703_v12 = vpop.f32.mrf.mxu1  ;;  %v3723_v43 = vpop.f32.mrf.mxu0 }
 0x63d   :  { %3967 = vmatpush3.bf16.msra.mxu1 %v4170_v55  ;;  %v1267_v42 = vadd.f32 %v3723_v43, %v3703_v12 }
 0x63e   :  { %3987 = vmatpush3.bf16.msra.mxu0 %v4171_v56  ;;  %3968 = vmatprep.subr.bf16.mxu1 %v4172_v4  ;;  %v1161_v13 = vpop.f32.mrf.mxu1  ;;  %v1258_v14 = vpop.f32.mrf.mxu0 }
 0x63f   :  { %3988 = vmatprep.subr.bf16.mxu0 %v4173_v57  ;;  %v1259_v48 = vadd.f32 %v1258_v14, %v1161_v13 }
 0x641   :  { %3969 = vmatpush3.bf16.msra.mxu1 %v4172_v4 }
 0x642   :  { %3989 = vmatpush3.bf16.msra.mxu0 %v4173_v57  ;;  %3970 = vmatprep.subr.bf16.mxu1 %v4174_v58 }
 0x643   :  { %3990 = vmatprep.subr.bf16.mxu0 %v4175_v59 }
 0x645   :  { %3971 = vmatpush3.bf16.msra.mxu1 %v4174_v58 }
 0x646   :  { %3991 = vmatpush3.bf16.msra.mxu0 %v4175_v59  ;;  %3972 = vmatprep.subr.bf16.mxu1 %v4176_v60 }
 0x647   :  { %3992 = vmatprep.subr.bf16.mxu0 %v4177_v61 }
 0x649   :  { %3973 = vmatpush3.bf16.msra.mxu1 %v4176_v60 }
 0x64a   :  { %3993 = vmatpush3.bf16.msra.mxu0 %v4177_v61  ;;  %3974 = vmatprep.subr.bf16.mxu1 %v4178_v62 }
 0x64b   :  { %3994 = vmatprep.subr.bf16.mxu0 %v4179_v47 }
 0x64d   :  { %3975 = vmatpush3.bf16.msra.mxu1 %v4178_v62 }
 0x64e   :  { %3995 = vmatpush3.bf16.msra.mxu0 %v4179_v47  ;;  %3976 = vmatprep.subr.bf16.mxu1 %v4180_v63 }
 0x64f   :  { %3996 = vmatprep.subr.bf16.mxu0 %v4181_v0 }
 0x651   :  { %3977 = vmatpush3.bf16.msra.mxu1 %v4180_v63 }
 0x652   :  { %3997 = vmatpush3.bf16.msra.mxu0 %v4181_v0  ;;  %3978 = vmatprep.subr.bf16.mxu1 %v4182_v2 }
 0x653   :  { %3998 = vmatprep.subr.bf16.mxu0 %v4183_v3 }
 0x655   :  { %3979 = vmatpush3.bf16.msra.mxu1 %v4182_v2 }
 0x656   :  { %3999 = vmatpush3.bf16.msra.mxu0 %v4183_v3 }
 0x658   :  { %3981 = vmatmul.mubr.msk.bf16.vlgmr.msra.gmra.mxu1 %vm3356_vm14, %v4718_v17  ;;  %v3742_v15 = vpop.f32.mrf.mxu1  ;;  %v3762_v11 = vpop.f32.mrf.mxu0 }
 0x659   :  { %4001 = vmatmul.mubr.msk.bf16.vlgmr.msra.gmra.mxu0 %vm3370_vm0, %v4718_v17  ;;  %v1396_v45 = vadd.f32 %v3742_v15, %v1264_v5 }
 0x65a   :  { %v1379_v16 = vpop.f32.mrf.mxu1  ;;  %v1507_v44 = vpop.f32.mrf.mxu0 }
 0x65b   :  { %v1394_v49 = vadd.f32 %v1379_v16, %v1256_v41  ;;  %v1524_v52 = vadd.f32 %v3762_v11, %v1396_v45 }
 0x65c   :  { %v3743_v18 = vpop.f32.mrf.mxu1  ;;  %v3763_v19 = vpop.f32.mrf.mxu0 }
 0x65d   :  { %v1397_v50 = vadd.f32 %v3743_v18, %v1267_v42  ;;  %v1522_v55 = vadd.f32 %v1507_v44, %v1394_v49 }
 0x65e   :  { %v1382_v1 = vpop.f32.mrf.mxu1  ;;  %v1510_v20 = vpop.f32.mrf.mxu0 }
 0x65f   :  { %v1395_v53 = vadd.f32 %v1382_v1, %v1259_v48  ;;  %v1525_v56 = vadd.f32 %v3763_v19, %v1397_v50 }
 0x661   :  { %v1523_v58 = vadd.f32 %v1510_v20, %v1395_v53 }
 0x678   :  { %v3782_v21 = vpop.f32.mrf.mxu1 }
 0x679   :  { %v3802_v24 = vpop.f32.mrf.mxu0  ;;  %v1652_v4 = vadd.f32 %v3782_v21, %v1524_v52 }
 0x67a   :  { %v1635_v25 = vpop.f32.mrf.mxu1 }
 0x67b   :  { %v1763_v17 = vpop.f32.mrf.mxu0  ;;  %v1650_v59 = vadd.f32 %v1635_v25, %v1522_v55  ;;  %v1780_v62 = vadd.f32 %v3802_v24, %v1652_v4 }
 0x67c   :  { %v3783_v26 = vpop.f32.mrf.mxu1 }
 0x67d   :  { %v3803_v27 = vpop.f32.mrf.mxu0  ;;  %v1653_v60 = vadd.f32 %v3783_v26, %v1525_v56  ;;  %v1778_v0 = vadd.f32 %v1763_v17, %v1650_v59 }
 0x67e   :  { %v1638_v28 = vpop.f32.mrf.mxu1 }
 0x67f   :  { %v1766_v29 = vpop.f32.mrf.mxu0  ;;  %v1651_v47 = vadd.f32 %v1638_v28, %v1523_v58  ;;  %v1781_v2 = vadd.f32 %v3803_v27, %v1653_v60 }
 0x681   :  { %v1779_v22 = vadd.f32 %v1766_v29, %v1651_v47 }
 0x698   :  { %v3822_v30 = vpop.f32.mrf.mxu1 }
 0x699   :  { %v3842_v31 = vpop.f32.mrf.mxu0  ;;  %v1908_v3 = vadd.f32 %v3822_v30, %v1780_v62 }
 0x69a   :  { %v1891_v32 = vpop.f32.mrf.mxu1 }
 0x69b   :  { %v2019_v33 = vpop.f32.mrf.mxu0  ;;  %v1906_v8 = vadd.f32 %v1891_v32, %v1778_v0  ;;  %v2036_v43 = vadd.f32 %v3842_v31, %v1908_v3 }
 0x69c   :  { %v3823_v34 = vpop.f32.mrf.mxu1 }
 0x69d   :  { %v3843_v35 = vpop.f32.mrf.mxu0  ;;  %v1909_v10 = vadd.f32 %v3823_v34, %v1781_v2  ;;  %v2034_v15 = vadd.f32 %v2019_v33, %v1906_v8 }
 0x69e   :  { %v1894_v36 = vpop.f32.mrf.mxu1 }
 0x69f   :  { %v2022_v37 = vpop.f32.mrf.mxu0  ;;  %v1907_v13 = vadd.f32 %v1894_v36, %v1779_v22  ;;  %v2037_v11 = vadd.f32 %v3843_v35, %v1909_v10 }
 0x6a1   :  { %v2035_v19 = vadd.f32 %v2022_v37, %v1907_v13 }
 0x6b8   :  { %v3862_v6 = vpop.f32.mrf.mxu1 }
 0x6b9   :  { %v3882_v38 = vpop.f32.mrf.mxu0  ;;  %v2164_v16 = vadd.f32 %v3862_v6, %v2036_v43 }
 0x6ba   :  { %v2147_v39 = vpop.f32.mrf.mxu1 }
 0x6bb   :  { %v2275_v40 = vpop.f32.mrf.mxu0  ;;  %v2162_v1 = vadd.f32 %v2147_v39, %v2034_v15  ;;  %v2292_v24 = vadd.f32 %v3882_v38, %v2164_v16  ;;  %v3373_v16 = vld [vmem:[%s4829_s12] ss:$0 sm:$0xff] }
 0x6bc   :  { %v3863_v7 = vpop.f32.mrf.mxu1 }
 0x6bd   :  { %v3883_v46 = vpop.f32.mrf.mxu0  ;;  %v2165_v20 = vadd.f32 %v3863_v7, %v2037_v11  ;;  %v2290_v26 = vadd.f32 %v2275_v40, %v2162_v1 }
 0x6be   :  { %v2150_v51 = vpop.f32.mrf.mxu1 }
 0x6bf   :  { %v2278_v23 = vpop.f32.mrf.mxu0  ;;  %v2163_v25 = vadd.f32 %v2150_v51, %v2035_v19  ;;  %v2293_v27 = vadd.f32 %v3883_v46, %v2165_v20 }
 0x6c1   :  { %v2291_v30 = vadd.f32 %v2278_v23, %v2163_v25 }
 0x6d8   :  { %v3902_v54 = vpop.f32.mrf.mxu1 }
 0x6d9   :  { %v3922_v57 = vpop.f32.mrf.mxu0  ;;  %v2420_v28 = vadd.f32 %v3902_v54, %v2292_v24 }
 0x6da   :  { %v2403_v61 = vpop.f32.mrf.mxu1 }
 0x6db   :  { %v2531_v63 = vpop.f32.mrf.mxu0  ;;  %v2418_v31 = vadd.f32 %v2403_v61, %v2290_v26  ;;  %v2548_v33 = vadd.f32 %v3922_v57, %v2420_v28 }
 0x6dc   :  { %v3903_v9 = vpop.f32.mrf.mxu1 }
 0x6dd   :  { %v3923_v12 = vpop.f32.mrf.mxu0  ;;  %v2421_v32 = vadd.f32 %v3903_v9, %v2293_v27  ;;  %v2546_v6 = vadd.f32 %v2531_v63, %v2418_v31 }
 0x6de   :  { %v2406_v14 = vpop.f32.mrf.mxu1 }
 0x6df   :  { %v2534_v44 = vpop.f32.mrf.mxu0  ;;  %v2419_v35 = vadd.f32 %v2406_v14, %v2291_v30  ;;  %v2549_v5 = vadd.f32 %v3923_v12, %v2421_v32 }
 0x6e1   :  { %v2547_v7 = vadd.f32 %v2534_v44, %v2419_v35 }
 0x6f8   :  { %v3942_v18 = vpop.f32.mrf.mxu1 }
 0x6f9   :  { %v3962_v21 = vpop.f32.mrf.mxu0  ;;  %v2676_v37 = vadd.f32 %v3942_v18, %v2548_v33 }
 0x6fa   :  { %v2659_v17 = vpop.f32.mrf.mxu1 }
 0x6fb   :  { %v2787_v29 = vpop.f32.mrf.mxu0  ;;  %v2674_v41 = vadd.f32 %v2659_v17, %v2546_v6  ;;  %v2804_v40 = vadd.f32 %v3962_v21, %v2676_v37 }
 0x6fc   :  { %v3943_v34 = vpop.f32.mrf.mxu1 }
 0x6fd   :  { %v3963_v36 = vpop.f32.mrf.mxu0  ;;  %v2677_v38 = vadd.f32 %v3943_v34, %v2549_v5  ;;  %v2802_v50 = vadd.f32 %v2787_v29, %v2674_v41 }
 0x6fe   :  { %v2662_v39 = vpop.f32.mrf.mxu1 }
 0x6ff   :  { %v2790_v42 = vpop.f32.mrf.mxu0  ;;  %v2675_v46 = vadd.f32 %v2662_v39, %v2547_v7  ;;  %v2805_v51 = vadd.f32 %v3963_v36, %v2677_v38 }
 0x701   :  { %v2803_v54 = vadd.f32 %v2790_v42, %v2675_v46 }
 0x718   :  { %v3982_v45 = vpop.f32.mrf.mxu1 }
 0x719   :  { %v4002_v48 = vpop.f32.mrf.mxu0  ;;  %v2932_v52 = vadd.f32 %v3982_v45, %v2804_v40 }
 0x71a   :  { %v2915_v49 = vpop.f32.mrf.mxu1 }
 0x71b   :  { %v3043_v53 = vpop.f32.mrf.mxu0  ;;  %v2930_v55 = vadd.f32 %v2915_v49, %v2802_v50  ;;  %v3060_v58 = vadd.f32 %v4002_v48, %v2932_v52 }
 0x71c   :  { %v3983_v23 = vpop.f32.mrf.mxu1 }
 0x71d   :  { %v2933_v56 = vadd.f32 %v3983_v23, %v2805_v51  ;;  %v4003_v4 = vpop.f32.mrf.mxu0  ;;  %v3058_v62 = vadd.f32 %v3043_v53, %v2930_v55 }
 0x71e   :  { %v2918_v57 = vpop.f32.mrf.mxu1 }
 0x71f   :  { %v3061_v59 = vadd.f32 %v4003_v4, %v2933_v56  ;;  %v2931_v60 = vadd.f32 %v2918_v57, %v2803_v54  ;;  %v3046_v61 = vpop.f32.mrf.mxu0 }
 0x721   :  { %v3069_v47 = vadd.f32 %v3061_v59, %v3060_v58  ;;  %v3059_v63 = vadd.f32 %v3046_v61, %v2931_v60 }
 0x723   :  { %v3070_v0 = vrot.slane %v3069_v47, 4  ;;  %v3062_v2 = vadd.f32 %v3059_v63, %v3058_v62 }
 0x725   :  { %v3071_v3 = vadd.f32 %v3070_v0, %v3069_v47  ;;  %v3063_v9 = vrot.slane %v3062_v2, 4 }
 0x727   :  { %v3072_v22 = vrot.slane %v3071_v3, 2  ;;  %v3064_v8 = vadd.f32 %v3063_v9, %v3062_v2 }
 0x729   :  { %v3073_v10 = vadd.f32 %v3072_v22, %v3071_v3  ;;  %v3065_v12 = vrot.slane %v3064_v8, 2 }
 0x72b   :  { %v3074_v43 = vrot.slane %v3073_v10, 1  ;;  %v3066_v13 = vadd.f32 %v3065_v12, %v3064_v8 }
 0x72d   :  { %v3067_v14 = vrot.slane %v3066_v13, 1  ;;  %v3075_v15 = vadd.f32 %v3074_v43, %v3073_v10 }
 0x72f   :  { %v3068_v11 = vadd.f32 %v3067_v14, %v3066_v13 }
 0x731   :  { %v3077_v44 = vsel %vm3076_vm15, %v3068_v11, %v3075_v15 }
 0x732   :  { %v3085_v18 = vadd.f32 %v3373_v16, %v3077_v44 }
 0x734   :  { %3086 = vst [vmem:[#allocation11] sm:$0x3] %v3085_v18 }
 0x735   :  { %4295 = shalt.err (!%p4292_p1)
}
 0x736   :  { %3096 = dma.vmem_to_hbm [thread:$0]  %s3094_s18, 32, %s4830_s13, [#allocation4]  }
 0x737   :  { %4310 = dma.done.wait [#allocation4], 32  }
 0x738   :  { %4311 = vsyncadd [#allocation4], 4294967264 }
 0x739   :  { %3100 = vsyncpa [#allocation3], 1 }
 0x73a   :  { %3101 = vsyncpa [#allocation6], 1 }
 0x73b   :  { %3102 = vsyncpa [#allocation9], 1 }
 0x73c   :  { %3103 = vsyncpa [#allocation4], 1 }

</bundles_post_ra>
